<compile_context>
chip_gen: v6e
topology: v6e:2x2x1
jax: 0.10.0
libtpu: 0.0.40
codegen_flags: <defaults>
</compile_context>

<pallas_src>
import math

import jax
import jax.numpy as jnp
from jax.experimental import pallas as pl
from jax.experimental.pallas import tpu as pltpu

LANE = 128
SUBLANE = 8
_MiB = 1024 * 1024


def _round_up(x, m):
    return ((x + m - 1) // m) * m


def _vmem_limit(bytes_needed, cap=64 * _MiB):
    # Valid on all generations (v7x physical VMEM is 64 MiB per TC).
    return int(min(cap, max(bytes_needed + 4 * _MiB, 16 * _MiB)))


# ---------------------------------------------------------------------------
# Kernels
# ---------------------------------------------------------------------------
def _fused_small_kernel(a_ref, x_ref, w1_ref, b1_ref, w2_ref, b2_ref,
                        p_ref, wfc_ref, bfc_ref, out_ref):
    """Whole forward pass in one VMEM-resident block (small-N fast path).

    out = ((P @ relu(A @ relu(A @ X @ W1 + b1) @ W2 + b2)) @ Wfc) + bfc
    bf16 MXU operands, f32 accumulation; bias/ReLU in f32 (v5e has no bf16 VPU).
    """
    a = a_ref[...]

    ax = jnp.dot(a, x_ref[...], preferred_element_type=jnp.float32)
    h1 = jnp.maximum(
        jnp.dot(ax.astype(jnp.bfloat16), w1_ref[...],
                preferred_element_type=jnp.float32) + b1_ref[...],
        0.0).astype(jnp.bfloat16)

    ah = jnp.dot(a, h1, preferred_element_type=jnp.float32)
    h2 = jnp.maximum(
        jnp.dot(ah.astype(jnp.bfloat16), w2_ref[...],
                preferred_element_type=jnp.float32) + b2_ref[...],
        0.0).astype(jnp.bfloat16)

    pooled = jnp.dot(p_ref[...], h2, preferred_element_type=jnp.float32)
    out_ref[...] = (jnp.dot(pooled.astype(jnp.bfloat16), wfc_ref[...],
                            preferred_element_type=jnp.float32) + bfc_ref[...])


def _gcn_layer_kernel(a_ref, x_ref, w_ref, b_ref, h_ref, acc_ref):
    """Tiled GCN layer:  H = relu((A_hat @ X) @ W + b).

    grid = (n_pad//tm [rows, parallel], n_pad//tk [contraction, arbitrary, last]).
    X is fully VMEM-resident (constant index_map); the (tk)-row panel is sliced
    in-kernel.  acc_ref holds the per-row-tile partial A_hat @ X in f32.
    """
    k = pl.program_id(1)
    tk = a_ref.shape[1]

    @pl.when(k == 0)
    def _():
        acc_ref[...] = jnp.zeros_like(acc_ref)

    ks = pl.multiple_of(k * tk, LANE)
    acc_ref[...] += jnp.dot(a_ref[...], x_ref[pl.ds(ks, tk), :],
                            preferred_element_type=jnp.float32)

    @pl.when(k == pl.num_programs(1) - 1)
    def _():
        # Cheap finalize, once per row tile: @W, +bias, ReLU (f32 on VPU).
        h = jnp.dot(acc_ref[...].astype(jnp.bfloat16), w_ref[...],
                    preferred_element_type=jnp.float32) + b_ref[...]
        h_ref[...] = jnp.maximum(h, 0.0).astype(h_ref.dtype)


def _gcn_pool_kernel(a_ref, h1_ref, w_ref, b_ref, p_ref, part_ref, acc_ref):
    """Tiled GCN layer 2 with fused mean-pool:  part[i] = P[:, tile_i] @ H2[tile_i].

    H2 never touches HBM; each row tile emits its own pooled partial slab so the
    row axis stays "parallel"-safe on v7x megacore.
    """
    k = pl.program_id(1)
    tk = a_ref.shape[1]

    @pl.when(k == 0)
    def _():
        acc_ref[...] = jnp.zeros_like(acc_ref)

    ks = pl.multiple_of(k * tk, LANE)
    acc_ref[...] += jnp.dot(a_ref[...], h1_ref[pl.ds(ks, tk), :],
                            preferred_element_type=jnp.float32)

    @pl.when(k == pl.num_programs(1) - 1)
    def _():
        h2 = jnp.maximum(
            jnp.dot(acc_ref[...].astype(jnp.bfloat16), w_ref[...],
                    preferred_element_type=jnp.float32) + b_ref[...],
            0.0)
        part = jnp.dot(p_ref[...], h2.astype(jnp.bfloat16),
                       preferred_element_type=jnp.float32)
        part_ref[...] = part[None, :, :]


# ---------------------------------------------------------------------------
# pallas_call wrappers
# ---------------------------------------------------------------------------
def _forward_fused(a_bf, x_bf, w1_bf, b1_f, w2_bf, b2_f, p_bf, wfc_bf, bfc_f):
    n_pad = a_bf.shape[0]
    f_in = x_bf.shape[1]
    h_dim = w1_bf.shape[1]
    g_pad, o_dim = p_bf.shape[0], wfc_bf.shape[1]

    input_bytes = ((a_bf.size + x_bf.size + w1_bf.size + w2_bf.size
                    + p_bf.size + wfc_bf.size) * 2
                   + (b1_f.size + b2_f.size + bfc_f.size) * 4)
    interm_bytes = n_pad * (f_in + 3 * h_dim) * 4          # AX, H1, AH1, H2
    vmem = _vmem_limit(2 * a_bf.size * 2 + input_bytes + 2 * interm_bytes)

    cost = pl.CostEstimate(
        flops=(2 * n_pad * n_pad * (f_in + h_dim)
               + 2 * n_pad * h_dim * (f_in + h_dim)
               + 2 * g_pad * n_pad * h_dim + 2 * g_pad * h_dim * o_dim),
        transcendentals=0,
        bytes_accessed=input_bytes + g_pad * o_dim * 4,
    )
    vspec = pl.BlockSpec(memory_space=pltpu.MemorySpace.VMEM)
    return pl.pallas_call(
        _fused_small_kernel,
        out_shape=jax.ShapeDtypeStruct((g_pad, o_dim), jnp.float32),
        in_specs=[vspec] * 9,
        out_specs=vspec,
        compiler_params=pltpu.CompilerParams(vmem_limit_bytes=vmem),
        cost_estimate=cost,
    )(a_bf, x_bf, w1_bf, b1_f, w2_bf, b2_f, p_bf, wfc_bf, bfc_f)


def _gcn_layer_tiled(a_bf, x_bf, w_bf, b_f32, *, tm, tk):
    n_pad = a_bf.shape[0]
    f_in, f_out = x_bf.shape[1], w_bf.shape[1]
    grid = (n_pad // tm, n_pad // tk)

    resident = (x_bf.size + w_bf.size) * 2 + b_f32.size * 4
    streamed = (tm * tk * 2 + tm * f_out * 2) * 2        # double-buffered A tile + H out
    vmem = _vmem_limit(resident + streamed + tm * f_in * 4)

    cost = pl.CostEstimate(
        flops=2 * n_pad * n_pad * f_in + 2 * n_pad * f_in * f_out,
        transcendentals=0,
        bytes_accessed=((a_bf.size + x_bf.size + w_bf.size) * 2
                        + b_f32.size * 4 + n_pad * f_out * 2),
    )
    return pl.pallas_call(
        _gcn_layer_kernel,
        out_shape=jax.ShapeDtypeStruct((n_pad, f_out), jnp.bfloat16),
        grid_spec=pltpu.PrefetchScalarGridSpec(
            num_scalar_prefetch=0,
            grid=grid,
            in_specs=[
                pl.BlockSpec((tm, tk), lambda i, k: (i, k)),       # A_hat tile (streamed)
                pl.BlockSpec((n_pad, f_in), lambda i, k: (0, 0)),  # X fully VMEM-resident
                pl.BlockSpec((f_in, f_out), lambda i, k: (0, 0)),  # W (resident)
                pl.BlockSpec((1, f_out), lambda i, k: (0, 0)),     # bias (resident)
            ],
            out_specs=pl.BlockSpec((tm, f_out), lambda i, k: (i, 0)),
            scratch_shapes=[pltpu.VMEM((tm, f_in), jnp.float32)],
        ),
        compiler_params=pltpu.CompilerParams(
            dimension_semantics=("parallel", "arbitrary"),
            vmem_limit_bytes=vmem,
        ),
        cost_estimate=cost,
    )(a_bf, x_bf, w_bf, b_f32)


def _gcn_pool_tiled(a_bf, h1_bf, w_bf, b_f32, p_bf, *, tm, tk):
    n_pad = a_bf.shape[0]
    h_dim, f_out = h1_bf.shape[1], w_bf.shape[1]
    g_pad = p_bf.shape[0]
    n_tiles_m = n_pad // tm
    grid = (n_tiles_m, n_pad // tk)

    resident = (h1_bf.size + w_bf.size) * 2 + b_f32.size * 4
    streamed = (tm * tk * 2 + g_pad * tm * 2 + g_pad * f_out * 4) * 2
    vmem = _vmem_limit(resident + streamed + tm * h_dim * 4)

    cost = pl.CostEstimate(
        flops=(2 * n_pad * n_pad * h_dim + 2 * n_pad * h_dim * f_out
               + 2 * g_pad * n_pad * f_out),
        transcendentals=0,
        bytes_accessed=((a_bf.size + h1_bf.size + w_bf.size + p_bf.size) * 2
                        + b_f32.size * 4 + n_tiles_m * g_pad * f_out * 4),
    )
    return pl.pallas_call(
        _gcn_pool_kernel,
        out_shape=jax.ShapeDtypeStruct((n_tiles_m, g_pad, f_out), jnp.float32),
        grid_spec=pltpu.PrefetchScalarGridSpec(
            num_scalar_prefetch=0,
            grid=grid,
            in_specs=[
                pl.BlockSpec((tm, tk), lambda i, k: (i, k)),        # A_hat tile (streamed)
                pl.BlockSpec((n_pad, h_dim), lambda i, k: (0, 0)),  # H1 fully VMEM-resident
                pl.BlockSpec((h_dim, f_out), lambda i, k: (0, 0)),  # W2 (resident)
                pl.BlockSpec((1, f_out), lambda i, k: (0, 0)),      # b2 (resident)
                pl.BlockSpec((g_pad, tm), lambda i, k: (0, i)),     # P column tile
            ],
            out_specs=pl.BlockSpec((1, g_pad, f_out), lambda i, k: (i, 0, 0)),
            scratch_shapes=[pltpu.VMEM((tm, h_dim), jnp.float32)],
        ),
        compiler_params=pltpu.CompilerParams(
            dimension_semantics=("parallel", "arbitrary"),
            vmem_limit_bytes=vmem,
        ),
        cost_estimate=cost,
    )(a_bf, h1_bf, w_bf, b_f32, p_bf)


def drug_graph_gnn(a_hat, x, w1, b1, w2, b2, pool_mat, wfc, bfc,
                   *, tm=256, tk=512, small_n_threshold=1024, force_tiled=False):
    """Forward pass of DrugGraphGNN.

    Dispatch:
      * n_pad <= small_n_threshold (and not force_tiled): single fully-fused
        VMEM-resident kernel (no grid, no HBM staging of H1/H2).
      * otherwise: tiled layer-1 kernel (H1 staged in HBM, bf16) + tiled
        layer-2 kernel with fused mean-pool emitting per-row-tile partials;
        the tiny (g, hidden) reduce + final Linear run in f32 JAX.

    `a_hat` may be the exact (n, n) f32 matrix, or a pre-padded (n_pad, n_pad)
    bf16 matrix (padded rows/cols zero) built once via
    build_normalized_adjacency(..., pad_to=n_pad, dtype=jnp.bfloat16).
    """
    n = x.shape[0]
    g = pool_mat.shape[0]
    f_in, hidden = w1.shape
    out_dim = wfc.shape[1]

    f_in_pad = _round_up(f_in, LANE)
    h_pad = _round_up(hidden, LANE)
    o_pad = _round_up(out_dim, LANE)
    g_pad = _round_up(g, SUBLANE)

    n128 = _round_up(n, LANE)
    use_fused = (n128 <= small_n_threshold) and not force_tiled
    if use_fused:
        n_pad = n128
        tm_eff = tk_eff = n_pad
    else:
        # Clamp tiles to the problem and pad N with lcm so the grid is exact.
        tm_eff = max(LANE, min(_round_up(tm, LANE), n128))
        tk_eff = max(LANE, min(_round_up(tk, LANE), n128))
        n_pad = _round_up(n128, math.lcm(tm_eff, tk_eff))

    def pad2(m, r, c):
        return jnp.pad(m, ((0, r - m.shape[0]), (0, c - m.shape[1])))

    if a_hat.shape == (n_pad, n_pad) and a_hat.dtype == jnp.bfloat16:
        a_bf = a_hat                                   # pre-padded, hoisted build
    else:
        a_bf = pad2(a_hat, n_pad, n_pad).astype(jnp.bfloat16)

    # Zero padding is inert: padded A_hat / P columns are zero, so padded node
    # rows (relu(bias)) never contribute; padded feature columns stay zero.
    x_bf = pad2(x, n_pad, f_in_pad).astype(jnp.bfloat16)
    p_bf = pad2(pool_mat, g_pad, n_pad).astype(jnp.bfloat16)
    w1_bf = pad2(w1, f_in_pad, h_pad).astype(jnp.bfloat16)
    w2_bf = pad2(w2, h_pad, h_pad).astype(jnp.bfloat16)
    b1_f = pad2(b1.reshape(1, -1), 1, h_pad).astype(jnp.float32)
    b2_f = pad2(b2.reshape(1, -1), 1, h_pad).astype(jnp.float32)

    if use_fused:
        wfc_bf = pad2(wfc, h_pad, o_pad).astype(jnp.bfloat16)
        bfc_f = pad2(bfc.reshape(1, -1), 1, o_pad).astype(jnp.float32)
        out_p = _forward_fused(a_bf, x_bf, w1_bf, b1_f, w2_bf, b2_f,
                               p_bf, wfc_bf, bfc_f)
        return out_p[:g, :out_dim]

    h1 = _gcn_layer_tiled(a_bf, x_bf, w1_bf, b1_f, tm=tm_eff, tk=tk_eff)
    partials = _gcn_pool_tiled(a_bf, h1, w2_bf, b2_f, p_bf, tm=tm_eff, tk=tk_eff)
    pooled = jnp.sum(partials, axis=0)[:g, :hidden]    # (g, hidden) f32, tiny
    return pooled @ wfc + bfc.reshape(1, -1)


# ---------------------------------------------------------------------------
# Plain-JAX glue: GCN normalization + mean-pool matrix (scatter ops)
# ---------------------------------------------------------------------------
# TODO(synk): the scatter-add adjacency build and one-hot pool-matrix build stay
# in plain JAX (no clean dense-scatter Pallas TPU equivalent).
def build_normalized_adjacency(edge_index, num_nodes, *, pad_to=None,
                               dtype=jnp.float32):
    """Dense A_hat = D^-1/2 (A + I) D^-1/2; duplicate edges scatter-ADD (PyG).

    With pad_to/dtype the padded bf16 matrix is built directly (padded rows and
    columns are exactly zero), hoisting the per-forward pad + cast passes.
    """
    n_pad = num_nodes if pad_to is None else pad_to
    src, dst = edge_index[0], edge_index[1]
    adj = jnp.zeros((n_pad, n_pad), jnp.float32)
    adj = adj.at[dst, src].add(1.0)
    idx = jnp.arange(num_nodes)
    adj = adj.at[idx, idx].add(1.0)                      # self-loops on real nodes only
    deg = jnp.sum(adj, axis=1)
    dinv = jnp.where(deg > 0, 1.0 / jnp.sqrt(deg), 0.0)
    return (dinv[:, None] * adj * dinv[None, :]).astype(dtype)


def build_mean_pool_matrix(batch, num_graphs):
    """P[g, i] = 1/|graph g| if node i in graph g else 0."""
    onehot = (batch[None, :] == jnp.arange(num_graphs)[:, None]).astype(jnp.float32)
    counts = jnp.maximum(jnp.sum(onehot, axis=1, keepdims=True), 1.0)
    return onehot / counts


def reference_forward(a_hat, x, w1, b1, w2, b2, pool_mat, wfc, bfc):
    h1 = jnp.maximum(a_hat @ (x @ w1) + b1, 0.0)
    h2 = jnp.maximum(a_hat @ (h1 @ w2) + b2, 0.0)
    return (pool_mat @ h2) @ wfc + bfc


if __name__ == "__main__":
    # 200 nodes across 4 graphs -> n_pad = 256.
    input_dim, hidden_dim, output_dim = 16, 32, 8
    num_graphs, nodes_per_graph = 4, 50
    num_nodes = num_graphs * nodes_per_graph

    key = jax.random.PRNGKey(0)
    kx, kw1, kb1, kw2, kb2, kwf, kbf = jax.random.split(key, 7)

    x = jax.random.normal(kx, (num_nodes, input_dim), jnp.float32)
    w1 = jax.random.normal(kw1, (input_dim, hidden_dim), jnp.float32) * 0.2
    b1 = jax.random.normal(kb1, (1, hidden_dim), jnp.float32) * 0.1
    w2 = jax.random.normal(kw2, (hidden_dim, hidden_dim), jnp.float32) * 0.2
    b2 = jax.random.normal(kb2, (1, hidden_dim), jnp.float32) * 0.1
    wfc = jax.random.normal(kwf, (hidden_dim, output_dim), jnp.float32) * 0.2
    bfc = jax.random.normal(kbf, (1, output_dim), jnp.float32) * 0.1

    # Synthetic undirected ring within each graph.
    edges = []
    for gi in range(num_graphs):
        base = gi * nodes_per_graph
        for i in range(nodes_per_graph):
            a, b = base + i, base + (i + 1) % nodes_per_graph
            edges.append((a, b))
            edges.append((b, a))
    edge_index = jnp.array(edges, dtype=jnp.int32).T          # [2, E]
    batch = jnp.repeat(jnp.arange(num_graphs, dtype=jnp.int32), nodes_per_graph)

    pool_mat = build_mean_pool_matrix(batch, num_graphs)

    # f32 exact-size A_hat only for the reference; padded bf16 A_hat built ONCE
    # for the kernels (hoisted out of the per-forward path, reused by both layers
    # and both dispatch paths).
    a_hat_ref = build_normalized_adjacency(edge_index, num_nodes)
    n_pad_demo = _round_up(num_nodes, LANE)                    # 256
    a_hat_bf = build_normalized_adjacency(edge_index, num_nodes,
                                          pad_to=n_pad_demo, dtype=jnp.bfloat16)

    ref = reference_forward(a_hat_ref, x, w1, b1, w2, b2, pool_mat, wfc, bfc)

    # 1) Default dispatch -> small-N fully-fused single-kernel fast path.
    out_fused = drug_graph_gnn(a_hat_bf, x, w1, b1, w2, b2, pool_mat, wfc, bfc)
    out_fused = jax.block_until_ready(out_fused)
    assert out_fused.shape == (num_graphs, output_dim)
    assert jnp.allclose(out_fused, ref, atol=3e-2, rtol=3e-2), "fused path mismatch"

    # 2) Forced tiled path (tm=tk=128 -> 2x2 grid) to exercise the large-N kernels.
    out_tiled = drug_graph_gnn(a_hat_bf, x, w1, b1, w2, b2, pool_mat, wfc, bfc,
                               force_tiled=True, tm=128, tk=128)
    out_tiled = jax.block_until_ready(out_tiled)
    assert out_tiled.shape == (num_graphs, output_dim)
    assert jnp.allclose(out_tiled, ref, atol=3e-2, rtol=3e-2), "tiled path mismatch"

    print("KERNEL_OK")
</pallas_src>

<mosaic_0001>
module attributes {stable_mosaic.version = 11 : i64} {
  func.func @_fused_small_kernel(%arg0: memref<256x256xbf16, #tpu.memory_space<vmem>>, %arg1: memref<256x128xbf16, #tpu.memory_space<vmem>>, %arg2: memref<128x128xbf16, #tpu.memory_space<vmem>>, %arg3: memref<1x128xf32, #tpu.memory_space<vmem>>, %arg4: memref<128x128xbf16, #tpu.memory_space<vmem>>, %arg5: memref<1x128xf32, #tpu.memory_space<vmem>>, %arg6: memref<8x256xbf16, #tpu.memory_space<vmem>>, %arg7: memref<128x128xbf16, #tpu.memory_space<vmem>>, %arg8: memref<1x128xf32, #tpu.memory_space<vmem>>, %arg9: memref<8x128xf32, #tpu.memory_space<vmem>>) attributes {dimension_semantics = [], scalar_prefetch = 0 : i64, scratch_operands = 0 : i64, tpu.core_type = #tpu.core_type<tc>} {
    %c0 = arith.constant 0 : index
    %c0_0 = arith.constant 0 : index
    %0 = vector.load %arg0[%c0, %c0_0] : memref<256x256xbf16, #tpu.memory_space<vmem>>, vector<256x256xbf16>
    %c0_1 = arith.constant 0 : index
    %c0_2 = arith.constant 0 : index
    %1 = vector.load %arg1[%c0_1, %c0_2] : memref<256x128xbf16, #tpu.memory_space<vmem>>, vector<256x128xbf16>
    %cst = arith.constant dense<0.000000e+00> : vector<256x128xf32>
    %2 = tpu.matmul %0, %1, %cst {dimension_numbers = #tpu.dot_dimension_numbers<[1], [0], [0], [1], [0, 0, 1, 1], [], []>} : vector<256x256xbf16>, vector<256x128xbf16>, vector<256x128xf32> -> vector<256x128xf32>
    %3 = arith.truncf %2 : vector<256x128xf32> to vector<256x128xbf16>
    %c0_3 = arith.constant 0 : index
    %c0_4 = arith.constant 0 : index
    %4 = vector.load %arg2[%c0_3, %c0_4] : memref<128x128xbf16, #tpu.memory_space<vmem>>, vector<128x128xbf16>
    %cst_5 = arith.constant dense<0.000000e+00> : vector<256x128xf32>
    %5 = tpu.matmul %3, %4, %cst_5 {dimension_numbers = #tpu.dot_dimension_numbers<[1], [0], [0], [1], [0, 0, 1, 1], [], []>} : vector<256x128xbf16>, vector<128x128xbf16>, vector<256x128xf32> -> vector<256x128xf32>
    %c0_6 = arith.constant 0 : index
    %c0_7 = arith.constant 0 : index
    %6 = vector.load %arg3[%c0_6, %c0_7] : memref<1x128xf32, #tpu.memory_space<vmem>>, vector<1x128xf32>
    %7 = vector.broadcast %6 : vector<1x128xf32> to vector<256x128xf32>
    %8 = arith.addf %5, %7 : vector<256x128xf32>
    %cst_8 = arith.constant 0.000000e+00 : f32
    %9 = vector.broadcast %cst_8 : f32 to vector<256x128xf32>
    %10 = arith.maximumf %8, %9 : vector<256x128xf32>
    %11 = arith.truncf %10 : vector<256x128xf32> to vector<256x128xbf16>
    %cst_9 = arith.constant dense<0.000000e+00> : vector<256x128xf32>
    %12 = tpu.matmul %0, %11, %cst_9 {dimension_numbers = #tpu.dot_dimension_numbers<[1], [0], [0], [1], [0, 0, 1, 1], [], []>} : vector<256x256xbf16>, vector<256x128xbf16>, vector<256x128xf32> -> vector<256x128xf32>
    %13 = arith.truncf %12 : vector<256x128xf32> to vector<256x128xbf16>
    %c0_10 = arith.constant 0 : index
    %c0_11 = arith.constant 0 : index
    %14 = vector.load %arg4[%c0_10, %c0_11] : memref<128x128xbf16, #tpu.memory_space<vmem>>, vector<128x128xbf16>
    %cst_12 = arith.constant dense<0.000000e+00> : vector<256x128xf32>
    %15 = tpu.matmul %13, %14, %cst_12 {dimension_numbers = #tpu.dot_dimension_numbers<[1], [0], [0], [1], [0, 0, 1, 1], [], []>} : vector<256x128xbf16>, vector<128x128xbf16>, vector<256x128xf32> -> vector<256x128xf32>
    %c0_13 = arith.constant 0 : index
    %c0_14 = arith.constant 0 : index
    %16 = vector.load %arg5[%c0_13, %c0_14] : memref<1x128xf32, #tpu.memory_space<vmem>>, vector<1x128xf32>
    %17 = vector.broadcast %16 : vector<1x128xf32> to vector<256x128xf32>
    %18 = arith.addf %15, %17 : vector<256x128xf32>
    %cst_15 = arith.constant 0.000000e+00 : f32
    %19 = vector.broadcast %cst_15 : f32 to vector<256x128xf32>
    %20 = arith.maximumf %18, %19 : vector<256x128xf32>
    %21 = arith.truncf %20 : vector<256x128xf32> to vector<256x128xbf16>
    %c0_16 = arith.constant 0 : index
    %c0_17 = arith.constant 0 : index
    %22 = vector.load %arg6[%c0_16, %c0_17] : memref<8x256xbf16, #tpu.memory_space<vmem>>, vector<8x256xbf16>
    %cst_18 = arith.constant dense<0.000000e+00> : vector<8x128xf32>
    %23 = tpu.matmul %22, %21, %cst_18 {dimension_numbers = #tpu.dot_dimension_numbers<[1], [0], [0], [1], [0, 0, 1, 1], [], []>} : vector<8x256xbf16>, vector<256x128xbf16>, vector<8x128xf32> -> vector<8x128xf32>
    %24 = arith.truncf %23 : vector<8x128xf32> to vector<8x128xbf16>
    %c0_19 = arith.constant 0 : index
    %c0_20 = arith.constant 0 : index
    %25 = vector.load %arg7[%c0_19, %c0_20] : memref<128x128xbf16, #tpu.memory_space<vmem>>, vector<128x128xbf16>
    %cst_21 = arith.constant dense<0.000000e+00> : vector<8x128xf32>
    %26 = tpu.matmul %24, %25, %cst_21 {dimension_numbers = #tpu.dot_dimension_numbers<[1], [0], [0], [1], [0, 0, 1, 1], [], []>} : vector<8x128xbf16>, vector<128x128xbf16>, vector<8x128xf32> -> vector<8x128xf32>
    %c0_22 = arith.constant 0 : index
    %c0_23 = arith.constant 0 : index
    %27 = vector.load %arg8[%c0_22, %c0_23] : memref<1x128xf32, #tpu.memory_space<vmem>>, vector<1x128xf32>
    %28 = vector.broadcast %27 : vector<1x128xf32> to vector<8x128xf32>
    %29 = arith.addf %26, %28 : vector<8x128xf32>
    %c0_24 = arith.constant 0 : index
    %c0_25 = arith.constant 0 : index
    %30 = vector.load %arg9[%c0_24, %c0_25] : memref<8x128xf32, #tpu.memory_space<vmem>>, vector<8x128xf32>
    tpu.vector_store %arg9[%c0_24, %c0_25], %29 {strides = array<i32>} : memref<8x128xf32, #tpu.memory_space<vmem>>, vector<8x128xf32>,
    return
  }
}

</mosaic_0001>

<bundles_post_ra>
// kernel: tpu_custom_call.1
= control target key start
LH: loop header
LB: loop body
LE: loop exit
PB: predicated region body
PF: predicated region fallthrough
CT: control target
= control target key end

     0   :  { %14 = vsyncpa [#allocation3], 0  ;;  %s2606_s0 = inlined_call_operand.hbm [shape: bf16[256,256], index: 0, kind: input, shape index: {}]   ;;  %s2607_s1 = inlined_call_operand.hbm [shape: bf16[256,128], index: 1, kind: input, shape index: {}]   ;;  %s2608_s2 = inlined_call_operand.hbm [shape: bf16[128,128], index: 2, kind: input, shape index: {}]   ;;  %s2609_s3 = inlined_call_operand.vmem [shape: f32[1,128], index: 3, kind: input, shape index: {}]   ;;  %s2610_s4 = inlined_call_operand.hbm [shape: bf16[128,128], index: 4, kind: input, shape index: {}]   ;;  %s2611_s5 = inlined_call_operand.vmem [shape: f32[1,128], index: 5, kind: input, shape index: {}]   ;;  %s2612_s6 = inlined_call_operand.vmem [shape: bf16[8,256], index: 6, kind: input, shape index: {}]   ;;  %s2613_s7 = inlined_call_operand.hbm [shape: bf16[128,128], index: 7, kind: input, shape index: {}]   ;;  %s2614_s8 = inlined_call_operand.vmem [shape: f32[1,128], index: 8, kind: input, shape index: {}]   ;;  %s2615_s9 = inlined_call_operand.hbm [shape: f32[8,128], index: 9, kind: output, shape index: {}]  }
   0x1   :  { %15 = vsyncpa [#allocation6], 0 }
   0x2   :  { %16 = vsyncpa [#allocation9], 0 }
   0x3   :  { %17 = vsyncpa [#allocation4], 0  ;;  %s2240_s30 = smov [#allocation5]  }
   0x4   :  { %s35_s10 = sshll.u32 %s2240_s30, 4  ;;  %s36_s10 = int_to_ptr.vmem [resolvable:$true] %s35_s10 }
   0x5   :  { %s2120_s11 = scalar_lea.vmem %s36_s10, 2048  ;;  %p2125_p1 = scmp.lt.s32.totalorder %s36_s10, %s36_s10 }
   0x6   :  { %p2121_p0 = scmp.ne.s32.totalorder %s36_s10, %s2120_s11  ;;  %p2126_p2 = scmp.lt.s32.totalorder %s2120_s11, %s2120_s11 }
   0x8   :  { %p2127_p3 = por %p2126_p2, %p2125_p1 }
   0xa   :  { %p2128_p4 = pnand %p2127_p3, %p2121_p0 }
   0xc   :  { %2131 = shalt.err (!%p2128_p4)
}
   0xd   :  { %s2241_s12 = smov 64   ;;  %s2242_s13 = smov 4  }
   0xe   :  { %41 = dma.hbm_to_vmem [thread:$0]  %s2607_s1, 2048, %s36_s10, [#allocation6], %s2241_s12, %s2241_s12, %s2242_s13  }
   0xf   :  { %s2243_s16 = smov [#allocation8]   ;;  %s2244_s18 = smov [#allocation2]  }
  0x10   :  { %s61_s17 = sshll.u32 %s2243_s16, 4  ;;  %s23_s19 = sshll.u32 %s2244_s18, 4  ;;  %s62_s17 = int_to_ptr.vmem [resolvable:$true] %s61_s17  ;;  %s24_s19 = int_to_ptr.vmem [resolvable:$true] %s23_s19 }
  0x11   :  { %s2140_s20 = scalar_lea.vmem %s62_s17, 1024  ;;  %p2145_p6 = scmp.lt.s32.totalorder %s62_s17, %s62_s17 }
  0x12   :  { %p2141_p5 = scmp.ne.s32.totalorder %s62_s17, %s2140_s20  ;;  %p2146_p7 = scmp.lt.s32.totalorder %s2140_s20, %s2140_s20 }
  0x14   :  { %p2147_p8 = por %p2146_p7, %p2145_p6 }
  0x16   :  { %p2148_p9 = pnand %p2147_p8, %p2141_p5 }
  0x18   :  { %2151 = shalt.err (!%p2148_p9)
}
  0x19   :  { %67 = dma.hbm_to_vmem [thread:$0]  %s2610_s4, 1024, %s62_s17, [#allocation9], %s2241_s12, %s2241_s12, %s2242_s13  }
  0x1a   :  { %s2160_s1 = scalar_lea.vmem %s24_s19, 4096  ;;  %p2165_p11 = scmp.lt.s32.totalorder %s24_s19, %s24_s19 }
  0x1b   :  { %p2161_p10 = scmp.ne.s32.totalorder %s24_s19, %s2160_s1  ;;  %p2166_p12 = scmp.lt.s32.totalorder %s2160_s1, %s2160_s1 }
  0x1d   :  { %p2167_p13 = por %p2166_p12, %p2165_p11 }
  0x1f   :  { %p2168_p0 = pnand %p2167_p13, %p2161_p10 }
  0x21   :  { %2171 = shalt.err (!%p2168_p0)
}
  0x22   :  { %s2245_s23 = smov 128   ;;  %s2246_s24 = smov 8  }
  0x23   :  { %29 = dma.hbm_to_vmem [thread:$0]  %s2606_s0, 4096, %s24_s19, [#allocation3], %s2245_s23, %s2245_s23, %s2246_s24  }
  0x24   :  { %s2247_s27 = smov [#allocation7]   ;;  %s2248_s29 = smov [#allocation10]  }
  0x25   :  { %s47_s28 = sshll.u32 %s2247_s27, 4  ;;  %s77_s30 = sshll.u32 %s2248_s29, 4  ;;  %s48_s28 = int_to_ptr.vmem [resolvable:$true] %s47_s28  ;;  %s78_s30 = int_to_ptr.vmem [resolvable:$true] %s77_s30 }
  0x26   :  { %s2180_s4 = scalar_lea.vmem %s48_s28, 1024  ;;  %p2185_p2 = scmp.lt.s32.totalorder %s48_s28, %s48_s28 }
  0x27   :  { %p2181_p1 = scmp.ne.s32.totalorder %s48_s28, %s2180_s4  ;;  %p2186_p3 = scmp.lt.s32.totalorder %s2180_s4, %s2180_s4 }
  0x29   :  { %p2187_p4 = por %p2186_p3, %p2185_p2 }
  0x2b   :  { %p2188_p5 = pnand %p2187_p4, %p2181_p1 }
  0x2d   :  { %2191 = shalt.err (!%p2188_p5)
}
  0x2e   :  { %53 = dma.hbm_to_vmem [thread:$0]  %s2608_s2, 1024, %s48_s28, [#allocation6], %s2241_s12, %s2241_s12, %s2242_s13  }
  0x2f   :  { %s2200_s0 = scalar_lea.vmem %s78_s30, 1024  ;;  %p2205_p7 = scmp.lt.s32.totalorder %s78_s30, %s78_s30 }
  0x30   :  { %p2201_p6 = scmp.ne.s32.totalorder %s78_s30, %s2200_s0  ;;  %p2206_p8 = scmp.lt.s32.totalorder %s2200_s0, %s2200_s0 }
  0x32   :  { %p2207_p9 = por %p2206_p8, %p2205_p7 }
  0x34   :  { %p2208_p10 = pnand %p2207_p9, %p2201_p6 }
  0x36   :  { %2211 = shalt.err (!%p2208_p10)
}
  0x37   :  { %83 = dma.hbm_to_vmem [thread:$0]  %s2613_s7, 1024, %s78_s30, [#allocation9], %s2241_s12, %s2241_s12, %s2242_s13  }
  0x38   :  { %2232 = dma.done.wait [#allocation3], 4096  }
  0x39   :  { %2233 = vsyncadd [#allocation3], 4294963200 }
  0x3a   :  { %2234 = dma.done.wait [#allocation6], 3072  }
  0x3b   :  { %2235 = vsyncadd [#allocation6], 4294964224 }
  0x3c   :  { %2236 = dma.done.wait [#allocation9], 2048  }
  0x3d   :  { %2237 = vsyncadd [#allocation9], 4294965248  ;;  %v2022_v0 = vld [vmem:[#allocation5 + $0x78] sm:$0xff]   ;;  %v2024_v2 = vld [vmem:[#allocation5 + $0x70] sm:$0xff]   ;;  %vm2250_vm0 = vmmov 0   ;;  %s2251_s17 = smov [#allocation11]  }
  0x3e   :  { %v2023_v1 = vld [vmem:[#allocation5 + $0x38] sm:$0xff]   ;;  %1591 = vmatprep.subr.bf16.mxu0 %v2022_v0  ;;  %v2025_v3 = vld [vmem:[#allocation5 + $0x30] sm:$0xff]   ;;  %v2026_v4 = vld [vmem:[#allocation5 + $0x68] sm:$0xff]   ;;  %s1503_s18 = sshll.u32 %s2251_s17, 4  ;;  %s1504_s18 = int_to_ptr.vmem [resolvable:$true] %s1503_s18 }
  0x3f   :  { %1592 = vmatpush3.bf16.msra.mxu0 %v2023_v1  ;;  %v2027_v5 = vld [vmem:[#allocation5 + $0x28] sm:$0xff]   ;;  %v2028_v6 = vld [vmem:[#allocation5 + $0x60] sm:$0xff]   ;;  %v2030_v8 = vld [vmem:[#allocation5 + $0x58] sm:$0xff]   ;;  %s2212_s19 = scalar_lea.vmem %s1504_s18, 128  ;;  %p2217_p12 = scmp.lt.s32.totalorder %s1504_s18, %s1504_s18 }
  0x40   :  { %1593 = vmatprep.subr.bf16.mxu0 %v2024_v2  ;;  %v2029_v7 = vld [vmem:[#allocation5 + $0x20] sm:$0xff]   ;;  %v2031_v9 = vld [vmem:[#allocation5 + $0x18] sm:$0xff]   ;;  %v2032_v10 = vld [vmem:[#allocation5 + $0x50] sm:$0xff]   ;;  %p2213_p11 = scmp.ne.s32.totalorder %s1504_s18, %s2212_s19  ;;  %p2218_p13 = scmp.lt.s32.totalorder %s2212_s19, %s2212_s19 }
  0x41   :  { %v2329_v11 = vld [vmem:[#allocation2 + $0x4] ss:$8 sps:$4 sm:$0xff]   ;;  %v2033_v12 = vld [vmem:[#allocation5 + $0x10] sm:$0xff]   ;;  %v2332_v17 = vld [vmem:[#allocation2] ss:$8 sps:$4 sm:$0xff]  }
  0x42   :  { %454 = vmatprep.mubr.bf16.mxu0 %v2329_v11  ;;  %v2034_v13 = vld [vmem:[#allocation5 + $0x48] sm:$0xff]   ;;  %v2036_v15 = vld [vmem:[#allocation5 + $0x40] sm:$0xff]   ;;  %v2334_v18 = vld [vmem:[#allocation2 + $0x14] ss:$8 sps:$4 sm:$0xff]   ;;  %p2219_p0 = por %p2218_p13, %p2217_p12 }
  0x43   :  { %1594 = vmatpush3.bf16.msra.mxu0 %v2025_v3  ;;  %v2035_v14 = vld [vmem:[#allocation5 + $0x8] sm:$0xff]   ;;  %v2037_v16 = vld [vmem:[#allocation5] sm:$0xff]   ;;  %v2338_v19 = vld [vmem:[#allocation2 + $0x10] ss:$8 sps:$4 sm:$0xff]  }
  0x44   :  { %1595 = vmatprep.subr.bf16.mxu0 %v2026_v4  ;;  %v2340_v20 = vld [vmem:[#allocation2 + $0x24] ss:$8 sps:$4 sm:$0xff]   ;;  %v2086_v21 = vld [vmem:[#allocation7 + $0x38] sm:$0xff]   ;;  %v2087_v22 = vld [vmem:[#allocation7 + $0x30] sm:$0xff]   ;;  %p2220_p1 = pnand %p2219_p0, %p2213_p11 }
  0x45   :  { %1894 = vmatprep.subr.bf16.mxu1 %v2086_v21  ;;  %v2088_v23 = vld [vmem:[#allocation7 + $0x28] sm:$0xff]   ;;  %v2089_v25 = vld [vmem:[#allocation7 + $0x20] sm:$0xff]   ;;  %v2346_v26 = vld [vmem:[#allocation2 + $0x34] ss:$8 sps:$4 sm:$0xff]  }
  0x46   :  { %1895 = vmatpush3.bf16.msra.mxu1 %v2086_v21  ;;  %v2344_v24 = vld [vmem:[#allocation2 + $0x20] ss:$8 sps:$4 sm:$0xff]   ;;  %v2350_v27 = vld [vmem:[#allocation2 + $0x30] ss:$8 sps:$4 sm:$0xff]   ;;  %v2352_v28 = vld [vmem:[#allocation2 + $0x44] ss:$8 sps:$4 sm:$0xff]  }
  0x47   :  { %1596 = vmatpush3.bf16.msra.mxu0 %v2027_v5  ;;  %1896 = vmatprep.subr.bf16.mxu1 %v2087_v22  ;;  %v2356_v29 = vld [vmem:[#allocation2 + $0x40] ss:$8 sps:$4 sm:$0xff]   ;;  %v2358_v30 = vld [vmem:[#allocation2 + $0x54] ss:$8 sps:$4 sm:$0xff]   ;;  %v2362_v31 = vld [vmem:[#allocation2 + $0x50] ss:$8 sps:$4 sm:$0xff]  }
  0x48   :  { %1597 = vmatprep.subr.bf16.mxu0 %v2028_v6  ;;  %v2364_v32 = vld [vmem:[#allocation2 + $0x64] ss:$8 sps:$4 sm:$0xff]   ;;  %v2368_v33 = vld [vmem:[#allocation2 + $0x60] ss:$8 sps:$4 sm:$0xff]   ;;  %v2370_v34 = vld [vmem:[#allocation2 + $0x74] ss:$8 sps:$4 sm:$0xff]  }
  0x49   :  { %v2374_v35 = vld [vmem:[#allocation2 + $0x70] ss:$8 sps:$4 sm:$0xff]   ;;  %v2376_v36 = vld [vmem:[#allocation2 + $0x84] ss:$8 sps:$4 sm:$0xff]   ;;  %v2380_v37 = vld [vmem:[#allocation2 + $0x80] ss:$8 sps:$4 sm:$0xff]  }
  0x4a   :  { %1897 = vmatpush3.bf16.msra.mxu1 %v2087_v22  ;;  %v2382_v38 = vld [vmem:[#allocation2 + $0x94] ss:$8 sps:$4 sm:$0xff]   ;;  %v2386_v40 = vld [vmem:[#allocation2 + $0x90] ss:$8 sps:$4 sm:$0xff]   ;;  %v2388_v41 = vld [vmem:[#allocation2 + $0xa4] ss:$8 sps:$4 sm:$0xff]  }
  0x4b   :  { %1598 = vmatpush3.bf16.msra.mxu0 %v2029_v7  ;;  %1898 = vmatprep.subr.bf16.mxu1 %v2088_v23  ;;  %v2090_v39 = vld [vmem:[#allocation7 + $0x18] sm:$0xff]   ;;  %v2091_v42 = vld [vmem:[#allocation7 + $0x10] sm:$0xff]   ;;  %v2092_v43 = vld [vmem:[#allocation7 + $0x8] sm:$0xff]  }
  0x4c   :  { %1599 = vmatprep.subr.bf16.mxu0 %v2030_v8  ;;  %v2392_v44 = vld [vmem:[#allocation2 + $0xa0] ss:$8 sps:$4 sm:$0xff]   ;;  %v2394_v45 = vld [vmem:[#allocation2 + $0xb4] ss:$8 sps:$4 sm:$0xff]   ;;  %v2398_v47 = vld [vmem:[#allocation2 + $0xb0] ss:$8 sps:$4 sm:$0xff]  }
  0x4d   :  { %2627 = vst [vmem:[#allocation16_spill] sm:$0xff] %v2392_v44  ;;  %2628 = vst [vmem:[#allocation17_spill] sm:$0xff] %v2394_v45  ;;  %v2093_v46 = vld [vmem:[#allocation7] sm:$0xff]   ;;  %v2406_v50 = vld [vmem:[#allocation2 + $0xd4] ss:$8 sps:$4 sm:$0xff]  }
  0x4e   :  { %1899 = vmatpush3.bf16.msra.mxu1 %v2088_v23  ;;  %2629 = vst [vmem:[#allocation18_spill] sm:$0xff] %v2398_v47  ;;  %v2400_v48 = vld [vmem:[#allocation2 + $0xc4] ss:$8 sps:$4 sm:$0xff]   ;;  %v2404_v49 = vld [vmem:[#allocation2 + $0xc0] ss:$8 sps:$4 sm:$0xff]   ;;  %2632 = vst [vmem:[#allocation21_spill] sm:$0xff] %v2406_v50 }
  0x4f   :  { %1600 = vmatpush3.bf16.msra.mxu0 %v2031_v9  ;;  %1900 = vmatprep.subr.bf16.mxu1 %v2089_v25  ;;  %2630 = vst [vmem:[#allocation19_spill] sm:$0xff] %v2400_v48  ;;  %2631 = vst [vmem:[#allocation20_spill] sm:$0xff] %v2404_v49  ;;  %v2410_v51 = vld [vmem:[#allocation2 + $0xd0] ss:$8 sps:$4 sm:$0xff]   ;;  %v2412_v52 = vld [vmem:[#allocation2 + $0xe4] ss:$8 sps:$4 sm:$0xff]  }
  0x50   :  { %1601 = vmatprep.subr.bf16.mxu0 %v2032_v10  ;;  %2633 = vst [vmem:[#allocation22_spill] sm:$0xff] %v2410_v51  ;;  %2634 = vst [vmem:[#allocation23_spill] sm:$0xff] %v2412_v52  ;;  %v2416_v53 = vld [vmem:[#allocation2 + $0xe0] ss:$8 sps:$4 sm:$0xff]   ;;  %v2418_v54 = vld [vmem:[#allocation2 + $0xf4] ss:$8 sps:$4 sm:$0xff]  }
  0x51   :  { %2635 = vst [vmem:[#allocation24_spill] sm:$0xff] %v2416_v53  ;;  %2636 = vst [vmem:[#allocation25_spill] sm:$0xff] %v2418_v54  ;;  %v2422_v55 = vld [vmem:[#allocation2 + $0xf0] ss:$8 sps:$4 sm:$0xff]  }
  0x52   :  { %1901 = vmatpush3.bf16.msra.mxu1 %v2089_v25  ;;  %2637 = vst [vmem:[#allocation26_spill] sm:$0xff] %v2422_v55 }
  0x53   :  { %1602 = vmatpush3.bf16.msra.mxu0 %v2033_v12  ;;  %1902 = vmatprep.subr.bf16.mxu1 %v2090_v39 }
  0x54   :  { %1603 = vmatprep.subr.bf16.mxu0 %v2034_v13 }
  0x56   :  { %1903 = vmatpush3.bf16.msra.mxu1 %v2090_v39 }
  0x57   :  { %1604 = vmatpush3.bf16.msra.mxu0 %v2035_v14  ;;  %1904 = vmatprep.subr.bf16.mxu1 %v2091_v42 }
  0x58   :  { %1605 = vmatprep.subr.bf16.mxu0 %v2036_v15 }
  0x5a   :  { %1905 = vmatpush3.bf16.msra.mxu1 %v2091_v42 }
  0x5b   :  { %1606 = vmatpush3.bf16.msra.mxu0 %v2037_v16  ;;  %1906 = vmatprep.subr.bf16.mxu1 %v2092_v43 }
  0x5e   :  { %455 = vmatmul.mubr.bf16.vlgmr.msra.gmra.mxu0 %v2332_v17  ;;  %1907 = vmatpush3.bf16.msra.mxu1 %v2092_v43 }
  0x5f   :  { %462 = vmatprep.mubr.bf16.mxu0 %v2334_v18  ;;  %1908 = vmatprep.subr.bf16.mxu1 %v2093_v46 }
  0x62   :  { %1909 = vmatpush3.bf16.msra.mxu1 %v2093_v46 }
  0x66   :  { %463 = vmatmul.mubr.bf16.gmra.mxu0 %v2338_v19 }
  0x67   :  { %470 = vmatprep.mubr.bf16.mxu0 %v2340_v20 }
  0x6e   :  { %471 = vmatmul.mubr.bf16.gmra.mxu0 %v2344_v24 }
  0x6f   :  { %478 = vmatprep.mubr.bf16.mxu0 %v2346_v26 }
  0x76   :  { %479 = vmatmul.mubr.bf16.gmra.mxu0 %v2350_v27 }
  0x77   :  { %486 = vmatprep.mubr.bf16.mxu0 %v2352_v28 }
  0x7e   :  { %487 = vmatmul.mubr.bf16.gmra.mxu0 %v2356_v29 }
  0x7f   :  { %494 = vmatprep.mubr.bf16.mxu0 %v2358_v30 }
  0x86   :  { %495 = vmatmul.mubr.bf16.gmra.mxu0 %v2362_v31 }
  0x87   :  { %502 = vmatprep.mubr.bf16.mxu0 %v2364_v32 }
  0x8e   :  { %503 = vmatmul.mubr.bf16.gmra.mxu0 %v2368_v33 }
  0x8f   :  { %510 = vmatprep.mubr.bf16.mxu0 %v2370_v34 }
  0x96   :  { %511 = vmatmul.mubr.bf16.gmra.mxu0 %v2374_v35 }
  0x97   :  { %518 = vmatprep.mubr.bf16.mxu0 %v2376_v36 }
  0x9e   :  { %519 = vmatmul.mubr.bf16.gmra.mxu0 %v2380_v37 }
  0x9f   :  { %526 = vmatprep.mubr.bf16.mxu0 %v2382_v38 }
  0xa6   :  { %527 = vmatmul.mubr.bf16.gmra.mxu0 %v2386_v40 }
  0xa7   :  { %534 = vmatprep.mubr.bf16.mxu0 %v2388_v41 }
  0xae   :  { %535 = vmatmul.mubr.bf16.gmra.mxu0 %v2392_v44 }
  0xaf   :  { %542 = vmatprep.mubr.bf16.mxu0 %v2394_v45 }
  0xb6   :  { %543 = vmatmul.mubr.bf16.gmra.mxu0 %v2398_v47 }
  0xb7   :  { %550 = vmatprep.mubr.bf16.mxu0 %v2400_v48 }
  0xbe   :  { %551 = vmatmul.mubr.bf16.gmra.mxu0 %v2404_v49 }
  0xbf   :  { %558 = vmatprep.mubr.bf16.mxu0 %v2406_v50 }
  0xc6   :  { %559 = vmatmul.mubr.bf16.gmra.mxu0 %v2410_v51 }
  0xc7   :  { %566 = vmatprep.mubr.bf16.mxu0 %v2412_v52 }
  0xce   :  { %567 = vmatmul.mubr.bf16.gmra.mxu0 %v2416_v53 }
  0xcf   :  { %574 = vmatprep.mubr.bf16.mxu0 %v2418_v54 }
  0xd6   :  { %575 = vmatmul.mubr.bf16.gmra.mxu0 %v2422_v55 }
 0x11e   :  { %v1607_v56 = vpop.f32.mrf.mxu0 }
 0x120   :  { %v1608_v57 = vpop.f32.mrf.mxu0 }
 0x121   :  { %v1609_v60 = vadd.f32 %v1608_v57, %v1607_v56 }
 0x122   :  { %v1610_v58 = vpop.f32.mrf.mxu0 }
 0x124   :  { %v1611_v59 = vpop.f32.mrf.mxu0 }
 0x125   :  { %v1612_v61 = vadd.f32 %v1611_v59, %v1610_v58 }
 0x126   :  { %v1613_v62 = vpop.f32.mrf.mxu0 }
 0x127   :  { %v583_v63 = vpack.c.bf16 %v1612_v61, %v1609_v60 }
 0x128   :  { %v1614_v0 = vpop.f32.mrf.mxu0 }
 0x129   :  { %1910 = vmatprep.mubr.bf16.mxu1 %v583_v63  ;;  %v1615_v3 = vadd.f32 %v1614_v0, %v1613_v62 }
 0x12a   :  { %v1616_v1 = vpop.f32.mrf.mxu0 }
 0x12c   :  { %v1617_v2 = vpop.f32.mrf.mxu0 }
 0x12d   :  { %v1618_v4 = vadd.f32 %v1617_v2, %v1616_v1 }
 0x12e   :  { %v1619_v5 = vpop.f32.mrf.mxu0 }
 0x12f   :  { %v584_v6 = vpack.c.bf16 %v1618_v4, %v1615_v3 }
 0x130   :  { %v1620_v7 = vpop.f32.mrf.mxu0 }
 0x131   :  { %1911 = vmatmul.mubr.bf16.vlgmr.msra.gmra.mxu1 %v584_v6  ;;  %v1621_v10 = vadd.f32 %v1620_v7, %v1619_v5 }
 0x132   :  { %v1622_v8 = vpop.f32.mrf.mxu0 }
 0x134   :  { %v1623_v9 = vpop.f32.mrf.mxu0 }
 0x135   :  { %v1624_v12 = vadd.f32 %v1623_v9, %v1622_v8 }
 0x136   :  { %v1625_v13 = vpop.f32.mrf.mxu0 }
 0x137   :  { %v585_v14 = vpack.c.bf16 %v1624_v12, %v1621_v10 }
 0x138   :  { %v1626_v15 = vpop.f32.mrf.mxu0 }
 0x139   :  { %1914 = vmatprep.mubr.bf16.mxu1 %v585_v14  ;;  %v1627_v22 = vadd.f32 %v1626_v15, %v1625_v13 }
 0x13a   :  { %v1628_v16 = vpop.f32.mrf.mxu0 }
 0x13c   :  { %v1629_v21 = vpop.f32.mrf.mxu0 }
 0x13d   :  { %v1630_v23 = vadd.f32 %v1629_v21, %v1628_v16 }
 0x13e   :  { %v1631_v25 = vpop.f32.mrf.mxu0 }
 0x13f   :  { %v586_v39 = vpack.c.bf16 %v1630_v23, %v1627_v22 }
 0x140   :  { %v1632_v42 = vpop.f32.mrf.mxu0 }
 0x141   :  { %1915 = vmatmul.mubr.bf16.gmra.mxu1 %v586_v39  ;;  %v1633_v56 = vadd.f32 %v1632_v42, %v1631_v25 }
 0x142   :  { %v1634_v43 = vpop.f32.mrf.mxu0 }
 0x144   :  { %v1635_v46 = vpop.f32.mrf.mxu0 }
 0x145   :  { %v1636_v57 = vadd.f32 %v1635_v46, %v1634_v43 }
 0x146   :  { %v1637_v58 = vpop.f32.mrf.mxu0 }
 0x147   :  { %v587_v59 = vpack.c.bf16 %v1636_v57, %v1633_v56 }
 0x148   :  { %v1638_v60 = vpop.f32.mrf.mxu0 }
 0x149   :  { %1918 = vmatprep.mubr.bf16.mxu1 %v587_v59  ;;  %v1639_v63 = vadd.f32 %v1638_v60, %v1637_v58 }
 0x14a   :  { %v1640_v61 = vpop.f32.mrf.mxu0 }
 0x14c   :  { %v1641_v62 = vpop.f32.mrf.mxu0 }
 0x14d   :  { %v1642_v0 = vadd.f32 %v1641_v62, %v1640_v61 }
 0x14e   :  { %v1643_v1 = vpop.f32.mrf.mxu0 }
 0x14f   :  { %v588_v2 = vpack.c.bf16 %v1642_v0, %v1639_v63 }
 0x150   :  { %v1644_v3 = vpop.f32.mrf.mxu0 }
 0x151   :  { %1919 = vmatmul.mubr.bf16.gmra.mxu1 %v588_v2  ;;  %v1645_v6 = vadd.f32 %v1644_v3, %v1643_v1 }
 0x152   :  { %v1646_v4 = vpop.f32.mrf.mxu0 }
 0x154   :  { %v1647_v5 = vpop.f32.mrf.mxu0 }
 0x155   :  { %v1648_v7 = vadd.f32 %v1647_v5, %v1646_v4 }
 0x156   :  { %v1649_v8 = vpop.f32.mrf.mxu0 }
 0x157   :  { %v589_v9 = vpack.c.bf16 %v1648_v7, %v1645_v6 }
 0x158   :  { %v1650_v10 = vpop.f32.mrf.mxu0 }
 0x159   :  { %1922 = vmatprep.mubr.bf16.mxu1 %v589_v9  ;;  %v1651_v14 = vadd.f32 %v1650_v10, %v1649_v8 }
 0x15a   :  { %v1652_v12 = vpop.f32.mrf.mxu0 }
 0x15c   :  { %v1653_v13 = vpop.f32.mrf.mxu0 }
 0x15d   :  { %v1654_v15 = vadd.f32 %v1653_v13, %v1652_v12 }
 0x15e   :  { %v1655_v16 = vpop.f32.mrf.mxu0 }
 0x15f   :  { %v590_v21 = vpack.c.bf16 %v1654_v15, %v1651_v14 }
 0x160   :  { %v1656_v22 = vpop.f32.mrf.mxu0 }
 0x161   :  { %1923 = vmatmul.mubr.bf16.gmra.mxu1 %v590_v21  ;;  %v1657_v39 = vadd.f32 %v1656_v22, %v1655_v16 }
 0x162   :  { %v1658_v23 = vpop.f32.mrf.mxu0 }
 0x164   :  { %v1659_v25 = vpop.f32.mrf.mxu0 }
 0x165   :  { %v1660_v42 = vadd.f32 %v1659_v25, %v1658_v23 }
 0x166   :  { %v1661_v43 = vpop.f32.mrf.mxu0 }
 0x167   :  { %v591_v46 = vpack.c.bf16 %v1660_v42, %v1657_v39 }
 0x168   :  { %v1662_v56 = vpop.f32.mrf.mxu0 }
 0x169   :  { %1926 = vmatprep.mubr.bf16.mxu1 %v591_v46  ;;  %v1663_v59 = vadd.f32 %v1662_v56, %v1661_v43 }
 0x16a   :  { %v1664_v57 = vpop.f32.mrf.mxu0 }
 0x16c   :  { %v1665_v58 = vpop.f32.mrf.mxu0 }
 0x16d   :  { %v1666_v60 = vadd.f32 %v1665_v58, %v1664_v57 }
 0x16e   :  { %v1667_v61 = vpop.f32.mrf.mxu0 }
 0x16f   :  { %v592_v62 = vpack.c.bf16 %v1666_v60, %v1663_v59 }
 0x170   :  { %v1668_v63 = vpop.f32.mrf.mxu0 }
 0x171   :  { %1927 = vmatmul.mubr.bf16.gmra.mxu1 %v592_v62  ;;  %v1669_v2 = vadd.f32 %v1668_v63, %v1667_v61 }
 0x172   :  { %v1670_v0 = vpop.f32.mrf.mxu0 }
 0x174   :  { %v1671_v1 = vpop.f32.mrf.mxu0 }
 0x175   :  { %v1672_v3 = vadd.f32 %v1671_v1, %v1670_v0 }
 0x176   :  { %v1673_v4 = vpop.f32.mrf.mxu0 }
 0x177   :  { %v593_v5 = vpack.c.bf16 %v1672_v3, %v1669_v2 }
 0x178   :  { %v1674_v6 = vpop.f32.mrf.mxu0 }
 0x179   :  { %1930 = vmatprep.mubr.bf16.mxu1 %v593_v5  ;;  %v1675_v9 = vadd.f32 %v1674_v6, %v1673_v4 }
 0x17a   :  { %v1676_v7 = vpop.f32.mrf.mxu0 }
 0x17c   :  { %v1677_v8 = vpop.f32.mrf.mxu0 }
 0x17d   :  { %v1678_v10 = vadd.f32 %v1677_v8, %v1676_v7 }
 0x17e   :  { %v1679_v12 = vpop.f32.mrf.mxu0 }
 0x17f   :  { %v594_v13 = vpack.c.bf16 %v1678_v10, %v1675_v9  ;;  %v2429_v9 = vld [vmem:[%s2609_s3] ss:$0 sm:$0xff] }
 0x180   :  { %v1680_v14 = vpop.f32.mrf.mxu0 }
 0x181   :  { %1931 = vmatmul.mubr.bf16.gmra.mxu1 %v594_v13  ;;  %v1681_v21 = vadd.f32 %v1680_v14, %v1679_v12 }
 0x182   :  { %v1682_v15 = vpop.f32.mrf.mxu0 }
 0x184   :  { %v1683_v16 = vpop.f32.mrf.mxu0 }
 0x185   :  { %v1684_v22 = vadd.f32 %v1683_v16, %v1682_v15 }
 0x186   :  { %v1685_v23 = vpop.f32.mrf.mxu0 }
 0x187   :  { %v595_v25 = vpack.c.bf16 %v1684_v22, %v1681_v21 }
 0x188   :  { %v1686_v39 = vpop.f32.mrf.mxu0 }
 0x189   :  { %1934 = vmatprep.mubr.bf16.mxu1 %v595_v25  ;;  %v1687_v46 = vadd.f32 %v1686_v39, %v1685_v23 }
 0x18a   :  { %v1688_v42 = vpop.f32.mrf.mxu0 }
 0x18c   :  { %v1689_v43 = vpop.f32.mrf.mxu0 }
 0x18d   :  { %v1690_v56 = vadd.f32 %v1689_v43, %v1688_v42 }
 0x18e   :  { %v1691_v57 = vpop.f32.mrf.mxu0 }
 0x18f   :  { %v596_v58 = vpack.c.bf16 %v1690_v56, %v1687_v46 }
 0x190   :  { %v1692_v59 = vpop.f32.mrf.mxu0 }
 0x191   :  { %1935 = vmatmul.mubr.bf16.gmra.mxu1 %v596_v58  ;;  %v1693_v62 = vadd.f32 %v1692_v59, %v1691_v57 }
 0x192   :  { %v1694_v60 = vpop.f32.mrf.mxu0 }
 0x194   :  { %v1695_v61 = vpop.f32.mrf.mxu0 }
 0x195   :  { %v1696_v63 = vadd.f32 %v1695_v61, %v1694_v60 }
 0x196   :  { %v1697_v0 = vpop.f32.mrf.mxu0 }
 0x197   :  { %v597_v1 = vpack.c.bf16 %v1696_v63, %v1693_v62 }
 0x198   :  { %v1698_v2 = vpop.f32.mrf.mxu0 }
 0x199   :  { %1938 = vmatprep.mubr.bf16.mxu1 %v597_v1  ;;  %v1699_v5 = vadd.f32 %v1698_v2, %v1697_v0 }
 0x19a   :  { %v1700_v3 = vpop.f32.mrf.mxu0 }
 0x19c   :  { %v1701_v4 = vpop.f32.mrf.mxu0 }
 0x19d   :  { %v1702_v6 = vadd.f32 %v1701_v4, %v1700_v3 }
 0x19f   :  { %v598_v7 = vpack.c.bf16 %v1702_v6, %v1699_v5 }
 0x1a1   :  { %1939 = vmatmul.mubr.bf16.gmra.mxu1 %v598_v7 }
 0x1a2   :  { %911 = vmatprep.mubr.bf16.mxu1 %v2329_v11 }
 0x1f1   :  { %v1912_v8 = vpop.f32.mrf.mxu1 }
 0x1f2   :  { %v713_v12 = vadd.f32 %v1912_v8, %v2429_v9 }
 0x1f3   :  { %v704_v10 = vpop.f32.mrf.mxu1 }
 0x1f4   :  { %v705_v14 = vadd.f32 %v2429_v9, %v704_v10  ;;  %v833_v21 = vmax.f32 %v713_v12, 0.0 }
 0x1f5   :  { %v1913_v13 = vpop.f32.mrf.mxu1 }
 0x1f6   :  { %v716_v15 = vadd.f32 %v1913_v13, %v2429_v9  ;;  %v831_v11 = vmax.f32 %v705_v14, 0.0 }
 0x1f7   :  { %v707_v16 = vpop.f32.mrf.mxu1 }
 0x1f8   :  { %v834_v22 = vmax.f32 %v716_v15, 0.0  ;;  %v708_v23 = vadd.f32 %v2429_v9, %v707_v16 }
 0x1fa   :  { %v2435_v25 = vpack.c.bf16 %v834_v22, %v833_v21  ;;  %v832_v39 = vmax.f32 %v708_v23, 0.0 }
 0x1fc   :  { %v2437_v42 = vpack.c.bf16 %v832_v39, %v831_v11 }
 0x201   :  { %v1916_v43 = vpop.f32.mrf.mxu1 }
 0x202   :  { %v729_v56 = vadd.f32 %v1916_v43, %v2429_v9 }
 0x203   :  { %v720_v46 = vpop.f32.mrf.mxu1 }
 0x204   :  { %v721_v58 = vadd.f32 %v2429_v9, %v720_v46  ;;  %v837_v61 = vmax.f32 %v729_v56, 0.0 }
 0x205   :  { %v1917_v57 = vpop.f32.mrf.mxu1 }
 0x206   :  { %v732_v59 = vadd.f32 %v1917_v57, %v2429_v9  ;;  %v835_v0 = vmax.f32 %v721_v58, 0.0 }
 0x207   :  { %v723_v60 = vpop.f32.mrf.mxu1 }
 0x208   :  { %v838_v62 = vmax.f32 %v732_v59, 0.0  ;;  %v724_v63 = vadd.f32 %v2429_v9, %v723_v60 }
 0x20a   :  { %v2443_v1 = vpack.c.bf16 %v838_v62, %v837_v61  ;;  %v836_v2 = vmax.f32 %v724_v63, 0.0 }
 0x20c   :  { %v2445_v3 = vpack.c.bf16 %v836_v2, %v835_v0 }
 0x211   :  { %v1920_v4 = vpop.f32.mrf.mxu1 }
 0x213   :  { %v736_v5 = vpop.f32.mrf.mxu1 }
 0x215   :  { %v1921_v6 = vpop.f32.mrf.mxu1 }
 0x217   :  { %v739_v7 = vpop.f32.mrf.mxu1 }
 0x221   :  { %v1924_v8 = vpop.f32.mrf.mxu1 }
 0x222   :  { %v761_v62 = vadd.f32 %v1924_v8, %v2429_v9 }
 0x223   :  { %v752_v10 = vpop.f32.mrf.mxu1 }
 0x224   :  { %v845_v49 = vmax.f32 %v761_v62, 0.0 }
 0x225   :  { %v1925_v12 = vpop.f32.mrf.mxu1 }
 0x226   :  { %v764_v59 = vadd.f32 %v1925_v12, %v2429_v9 }
 0x227   :  { %v755_v13 = vpop.f32.mrf.mxu1 }
 0x228   :  { %v846_v55 = vmax.f32 %v764_v59, 0.0  ;;  %v756_v54 = vadd.f32 %v2429_v9, %v755_v13 }
 0x22a   :  { %v870_v59 = vpack.c.bf16 %v846_v55, %v845_v49  ;;  %v844_v45 = vmax.f32 %v756_v54, 0.0 }
 0x231   :  { %v2447_v14 = vpop.f32.mrf.mxu1 }
 0x233   :  { %v2449_v15 = vpop.f32.mrf.mxu1 }
 0x235   :  { %v2451_v16 = vpop.f32.mrf.mxu1 }
 0x237   :  { %v2453_v21 = vpop.f32.mrf.mxu1 }
 0x241   :  { %v1932_v22 = vpop.f32.mrf.mxu1 }
 0x243   :  { %v784_v23 = vpop.f32.mrf.mxu1 }
 0x245   :  { %v1933_v11 = vpop.f32.mrf.mxu1 }
 0x246   :  { %v796_v49 = vadd.f32 %v1933_v11, %v2429_v9  ;;  %v785_v11 = vadd.f32 %v2429_v9, %v784_v23 }
 0x247   :  { %v787_v39 = vpop.f32.mrf.mxu1 }
 0x251   :  { %v1936_v43 = vpop.f32.mrf.mxu1 }
 0x252   :  { %v809_v8 = vadd.f32 %v1936_v43, %v2429_v9 }
 0x253   :  { %v800_v46 = vpop.f32.mrf.mxu1 }
 0x254   :  { %v857_v62 = vmax.f32 %v809_v8, 0.0  ;;  %v851_v8 = vmax.f32 %v785_v11, 0.0 }
 0x255   :  { %v1937_v56 = vpop.f32.mrf.mxu1 }
 0x256   :  { %v812_v52 = vadd.f32 %v1937_v56, %v2429_v9 }
 0x257   :  { %v803_v57 = vpop.f32.mrf.mxu1 }
 0x258   :  { %v858_v13 = vmax.f32 %v812_v52, 0.0  ;;  %v804_v44 = vadd.f32 %v2429_v9, %v803_v57 }
 0x25a   :  { %v876_v54 = vpack.c.bf16 %v858_v13, %v857_v62  ;;  %v856_v52 = vmax.f32 %v804_v44, 0.0 }
 0x261   :  { %v1940_v58 = vpop.f32.mrf.mxu1 }
 0x262   :  { %v825_v61 = vadd.f32 %v1940_v58, %v2429_v9  ;;  %v753_v58 = vadd.f32 %v2429_v9, %v752_v10  ;;  %v801_v10 = vadd.f32 %v2429_v9, %v800_v46  ;;  %v854_v46 = vmax.f32 %v796_v49, 0.0 }
 0x263   :  { %v816_v60 = vpop.f32.mrf.mxu1 }
 0x264   :  { %v817_v0 = vadd.f32 %v2429_v9, %v816_v60  ;;  %v861_v51 = vmax.f32 %v825_v61, 0.0  ;;  %v745_v61 = vadd.f32 %v1920_v4, %v2429_v9  ;;  %v855_v4 = vmax.f32 %v801_v10, 0.0 }
 0x265   :  { %v1941_v63 = vpop.f32.mrf.mxu1 }
 0x266   :  { %v828_v2 = vadd.f32 %v1941_v63, %v2429_v9  ;;  %v859_v48 = vmax.f32 %v817_v0, 0.0  ;;  %v748_v63 = vadd.f32 %v1921_v6, %v2429_v9  ;;  %v841_v55 = vmax.f32 %v745_v61, 0.0  ;;  %v2094_v61 = vld [vmem:[#allocation8 + $0x38] sm:$0xff]  }
 0x267   :  { %v819_v53 = vpop.f32.mrf.mxu1  ;;  %v788_v0 = vadd.f32 %v2429_v9, %v787_v39  ;;  %1942 = vmatprep.subr.bf16.mxu0 %v2094_v61 }
 0x268   :  { %v862_v50 = vmax.f32 %v828_v2, 0.0  ;;  %v820_v12 = vadd.f32 %v2429_v9, %v819_v53  ;;  %v843_v53 = vmax.f32 %v753_v58, 0.0  ;;  %v842_v43 = vmax.f32 %v748_v63, 0.0  ;;  %1943 = vmatpush3.bf16.msra.mxu0 %v2094_v61 }
 0x269   :  { %v875_v2 = vpack.c.bf16 %v856_v52, %v855_v4  ;;  %v777_v58 = vadd.f32 %v2447_v14, %v2429_v9 }
 0x26a   :  { %v878_v47 = vpack.c.bf16 %v862_v50, %v861_v51  ;;  %v860_v60 = vmax.f32 %v820_v12, 0.0  ;;  %v740_v50 = vadd.f32 %v2429_v9, %v739_v7  ;;  %v869_v51 = vpack.c.bf16 %v844_v45, %v843_v53  ;;  %v2095_v53 = vld [vmem:[#allocation8 + $0x30] sm:$0xff]  }
 0x26b   :  { %v868_v6 = vpack.c.bf16 %v842_v43, %v841_v55  ;;  %v849_v23 = vmax.f32 %v777_v58, 0.0  ;;  %1944 = vmatprep.subr.bf16.mxu0 %v2095_v53 }
 0x26c   :  { %v877_v56 = vpack.c.bf16 %v860_v60, %v859_v48  ;;  %1727 = vmatprep.subr.bf16.mxu1 %v878_v47  ;;  %v737_v48 = vadd.f32 %v2429_v9, %v736_v5  ;;  %v793_v47 = vadd.f32 %v1932_v22, %v2429_v9  ;;  %v840_v57 = vmax.f32 %v740_v50, 0.0  ;;  %1945 = vmatpush3.bf16.msra.mxu0 %v2095_v53 }
 0x26d   :  { %1728 = vmatpush3.bf16.msra.mxu1 %v870_v59  ;;  %v780_v5 = vadd.f32 %v2451_v16, %v2429_v9  ;;  %v852_v22 = vmax.f32 %v788_v0, 0.0  ;;  %v772_v60 = vadd.f32 %v2429_v9, %v2453_v21  ;;  %v769_v59 = vadd.f32 %v2429_v9, %v2449_v15  ;;  %v2097_v9 = vld [vmem:[#allocation8 + $0x20] sm:$0xff]  }
 0x26e   :  { %1729 = vmatprep.subr.bf16.mxu1 %v877_v56  ;;  %v839_v7 = vmax.f32 %v737_v48, 0.0  ;;  %v853_v45 = vmax.f32 %v793_v47, 0.0 }
 0x26f   :  { %v850_v39 = vmax.f32 %v780_v5, 0.0  ;;  %v873_v63 = vpack.c.bf16 %v852_v22, %v851_v8  ;;  %v848_v13 = vmax.f32 %v772_v60, 0.0  ;;  %v847_v56 = vmax.f32 %v769_v59, 0.0 }
 0x270   :  { %v867_v44 = vpack.c.bf16 %v840_v57, %v839_v7  ;;  %v874_v12 = vpack.c.bf16 %v854_v46, %v853_v45 }
 0x271   :  { %1730 = vmatpush3.bf16.msra.mxu1 %v869_v51  ;;  %v872_v16 = vpack.c.bf16 %v850_v39, %v849_v23  ;;  %v871_v14 = vpack.c.bf16 %v848_v13, %v847_v56 }
 0x272   :  { %1731 = vmatprep.subr.bf16.mxu1 %v876_v54 }
 0x275   :  { %1732 = vmatpush3.bf16.msra.mxu1 %v868_v6 }
 0x276   :  { %1733 = vmatprep.subr.bf16.mxu1 %v875_v2 }
 0x279   :  { %1734 = vmatpush3.bf16.msra.mxu1 %v867_v44 }
 0x27a   :  { %1735 = vmatprep.subr.bf16.mxu1 %v874_v12 }
 0x27d   :  { %1736 = vmatpush3.bf16.msra.mxu1 %v2443_v1  ;;  %v2096_v1 = vld [vmem:[#allocation8 + $0x28] sm:$0xff]  }
 0x27e   :  { %1737 = vmatprep.subr.bf16.mxu1 %v873_v63  ;;  %1946 = vmatprep.subr.bf16.mxu0 %v2096_v1 }
 0x27f   :  { %1947 = vmatpush3.bf16.msra.mxu0 %v2096_v1 }
 0x280   :  { %1948 = vmatprep.subr.bf16.mxu0 %v2097_v9 }
 0x281   :  { %1738 = vmatpush3.bf16.msra.mxu1 %v2445_v3 }
 0x282   :  { %1739 = vmatprep.subr.bf16.mxu1 %v872_v16 }
 0x283   :  { %1949 = vmatpush3.bf16.msra.mxu0 %v2097_v9 }
 0x285   :  { %1740 = vmatpush3.bf16.msra.mxu1 %v2435_v25 }
 0x286   :  { %1741 = vmatprep.subr.bf16.mxu1 %v871_v14 }
 0x289   :  { %1742 = vmatpush3.bf16.msra.mxu1 %v2437_v42 }
 0x28c   :  { %912 = vmatmul.mubr.bf16.vlgmr.msra.gmra.mxu1 %v2332_v17  ;;  %v2098_v17 = vld [vmem:[#allocation8 + $0x18] sm:$0xff]  }
 0x28d   :  { %919 = vmatprep.mubr.bf16.mxu1 %v2334_v18  ;;  %1950 = vmatprep.subr.bf16.mxu0 %v2098_v17  ;;  %v2099_v18 = vld [vmem:[#allocation8 + $0x10] sm:$0xff]  }
 0x28e   :  { %1951 = vmatpush3.bf16.msra.mxu0 %v2098_v17 }
 0x28f   :  { %1952 = vmatprep.subr.bf16.mxu0 %v2099_v18 }
 0x292   :  { %1953 = vmatpush3.bf16.msra.mxu0 %v2099_v18 }
 0x294   :  { %920 = vmatmul.mubr.bf16.gmra.mxu1 %v2338_v19  ;;  %v2100_v19 = vld [vmem:[#allocation8 + $0x8] sm:$0xff]  }
 0x295   :  { %927 = vmatprep.mubr.bf16.mxu1 %v2340_v20  ;;  %1954 = vmatprep.subr.bf16.mxu0 %v2100_v19  ;;  %v2101_v20 = vld [vmem:[#allocation8] sm:$0xff]  }
 0x296   :  { %1955 = vmatpush3.bf16.msra.mxu0 %v2100_v19 }
 0x297   :  { %1956 = vmatprep.subr.bf16.mxu0 %v2101_v20 }
 0x29a   :  { %1957 = vmatpush3.bf16.msra.mxu0 %v2101_v20 }
 0x29c   :  { %928 = vmatmul.mubr.bf16.gmra.mxu1 %v2344_v24  ;;  %v2638_v24 = vld [vmem:[#allocation16_spill] sm:$0xff] }
 0x29d   :  { %935 = vmatprep.mubr.bf16.mxu1 %v2346_v26  ;;  %v2639_v26 = vld [vmem:[#allocation17_spill] sm:$0xff] }
 0x2a4   :  { %936 = vmatmul.mubr.bf16.gmra.mxu1 %v2350_v27  ;;  %v2640_v27 = vld [vmem:[#allocation18_spill] sm:$0xff] }
 0x2a5   :  { %943 = vmatprep.mubr.bf16.mxu1 %v2352_v28  ;;  %v2641_v28 = vld [vmem:[#allocation19_spill] sm:$0xff] }
 0x2ac   :  { %944 = vmatmul.mubr.bf16.gmra.mxu1 %v2356_v29  ;;  %v2642_v29 = vld [vmem:[#allocation20_spill] sm:$0xff] }
 0x2ad   :  { %951 = vmatprep.mubr.bf16.mxu1 %v2358_v30  ;;  %v2643_v30 = vld [vmem:[#allocation21_spill] sm:$0xff] }
 0x2b4   :  { %952 = vmatmul.mubr.bf16.gmra.mxu1 %v2362_v31  ;;  %v2644_v31 = vld [vmem:[#allocation22_spill] sm:$0xff] }
 0x2b5   :  { %959 = vmatprep.mubr.bf16.mxu1 %v2364_v32  ;;  %v2645_v32 = vld [vmem:[#allocation23_spill] sm:$0xff] }
 0x2bc   :  { %960 = vmatmul.mubr.bf16.gmra.mxu1 %v2368_v33  ;;  %v2646_v33 = vld [vmem:[#allocation24_spill] sm:$0xff] }
 0x2bd   :  { %967 = vmatprep.mubr.bf16.mxu1 %v2370_v34  ;;  %v2647_v34 = vld [vmem:[#allocation25_spill] sm:$0xff] }
 0x2c4   :  { %968 = vmatmul.mubr.bf16.gmra.mxu1 %v2374_v35  ;;  %v2648_v35 = vld [vmem:[#allocation26_spill] sm:$0xff] }
 0x2c5   :  { %975 = vmatprep.mubr.bf16.mxu1 %v2376_v36 }
 0x2cc   :  { %976 = vmatmul.mubr.bf16.gmra.mxu1 %v2380_v37 }
 0x2cd   :  { %983 = vmatprep.mubr.bf16.mxu1 %v2382_v38 }
 0x2d4   :  { %984 = vmatmul.mubr.bf16.gmra.mxu1 %v2386_v40 }
 0x2d5   :  { %991 = vmatprep.mubr.bf16.mxu1 %v2388_v41 }
 0x2dc   :  { %992 = vmatmul.mubr.bf16.gmra.mxu1 %v2638_v24 }
 0x2dd   :  { %999 = vmatprep.mubr.bf16.mxu1 %v2639_v26 }
 0x2e4   :  { %1000 = vmatmul.mubr.bf16.gmra.mxu1 %v2640_v27 }
 0x2e5   :  { %1007 = vmatprep.mubr.bf16.mxu1 %v2641_v28 }
 0x2ec   :  { %1008 = vmatmul.mubr.bf16.gmra.mxu1 %v2642_v29 }
 0x2ed   :  { %1015 = vmatprep.mubr.bf16.mxu1 %v2643_v30 }
 0x2f4   :  { %1016 = vmatmul.mubr.bf16.gmra.mxu1 %v2644_v31 }
 0x2f5   :  { %1023 = vmatprep.mubr.bf16.mxu1 %v2645_v32 }
 0x2fc   :  { %1024 = vmatmul.mubr.bf16.gmra.mxu1 %v2646_v33 }
 0x2fd   :  { %1031 = vmatprep.mubr.bf16.mxu1 %v2647_v34 }
 0x304   :  { %1032 = vmatmul.mubr.bf16.gmra.mxu1 %v2648_v35 }
 0x34c   :  { %v1743_v36 = vpop.f32.mrf.mxu1 }
 0x34e   :  { %v1744_v37 = vpop.f32.mrf.mxu1 }
 0x34f   :  { %v1745_v41 = vadd.f32 %v1744_v37, %v1743_v36 }
 0x350   :  { %v1746_v38 = vpop.f32.mrf.mxu1 }
 0x352   :  { %v1747_v40 = vpop.f32.mrf.mxu1 }
 0x353   :  { %v1748_v25 = vadd.f32 %v1747_v40, %v1746_v38 }
 0x354   :  { %v1749_v42 = vpop.f32.mrf.mxu1 }
 0x355   :  { %v1040_v3 = vpack.c.bf16 %v1748_v25, %v1745_v41 }
 0x356   :  { %v1750_v15 = vpop.f32.mrf.mxu1 }
 0x357   :  { %1958 = vmatprep.mubr.bf16.mxu0 %v1040_v3  ;;  %v1751_v10 = vadd.f32 %v1750_v15, %v1749_v42 }
 0x358   :  { %v1752_v21 = vpop.f32.mrf.mxu1 }
 0x35a   :  { %v1753_v62 = vpop.f32.mrf.mxu1 }
 0x35b   :  { %v1754_v43 = vadd.f32 %v1753_v62, %v1752_v21 }
 0x35c   :  { %v1755_v50 = vpop.f32.mrf.mxu1 }
 0x35d   :  { %v1041_v51 = vpack.c.bf16 %v1754_v43, %v1751_v10 }
 0x35e   :  { %v1756_v49 = vpop.f32.mrf.mxu1 }
 0x35f   :  { %1959 = vmatmul.mubr.bf16.vlgmr.msra.gmra.mxu0 %v1041_v51  ;;  %v1757_v55 = vadd.f32 %v1756_v49, %v1755_v50 }
 0x360   :  { %v1758_v54 = vpop.f32.mrf.mxu1 }
 0x362   :  { %v1759_v52 = vpop.f32.mrf.mxu1 }
 0x363   :  { %v1760_v48 = vadd.f32 %v1759_v52, %v1758_v54 }
 0x364   :  { %v1761_v47 = vpop.f32.mrf.mxu1 }
 0x365   :  { %v1042_v4 = vpack.c.bf16 %v1760_v48, %v1757_v55 }
 0x366   :  { %v1762_v6 = vpop.f32.mrf.mxu1 }
 0x367   :  { %1962 = vmatprep.mubr.bf16.mxu0 %v1042_v4  ;;  %v1763_v0 = vadd.f32 %v1762_v6, %v1761_v47 }
 0x368   :  { %v1764_v57 = vpop.f32.mrf.mxu1 }
 0x36a   :  { %v1765_v46 = vpop.f32.mrf.mxu1 }
 0x36b   :  { %v1766_v2 = vadd.f32 %v1765_v46, %v1764_v57 }
 0x36c   :  { %v1767_v7 = vpop.f32.mrf.mxu1 }
 0x36d   :  { %v1043_v45 = vpack.c.bf16 %v1766_v2, %v1763_v0 }
 0x36e   :  { %v1768_v11 = vpop.f32.mrf.mxu1 }
 0x36f   :  { %1963 = vmatmul.mubr.bf16.gmra.mxu0 %v1043_v45  ;;  %v1769_v12 = vadd.f32 %v1768_v11, %v1767_v7 }
 0x370   :  { %v1770_v44 = vpop.f32.mrf.mxu1 }
 0x372   :  { %v1771_v5 = vpop.f32.mrf.mxu1 }
 0x373   :  { %v1772_v22 = vadd.f32 %v1771_v5, %v1770_v44 }
 0x374   :  { %v1773_v58 = vpop.f32.mrf.mxu1 }
 0x375   :  { %v1044_v8 = vpack.c.bf16 %v1772_v22, %v1769_v12 }
 0x376   :  { %v1774_v39 = vpop.f32.mrf.mxu1 }
 0x377   :  { %1966 = vmatprep.mubr.bf16.mxu0 %v1044_v8  ;;  %v1775_v23 = vadd.f32 %v1774_v39, %v1773_v58 }
 0x378   :  { %v1776_v60 = vpop.f32.mrf.mxu1 }
 0x37a   :  { %v1777_v63 = vpop.f32.mrf.mxu1 }
 0x37b   :  { %v1778_v59 = vadd.f32 %v1777_v63, %v1776_v60 }
 0x37c   :  { %v1779_v16 = vpop.f32.mrf.mxu1 }
 0x37d   :  { %v1045_v13 = vpack.c.bf16 %v1778_v59, %v1775_v23 }
 0x37e   :  { %v1780_v56 = vpop.f32.mrf.mxu1 }
 0x37f   :  { %1967 = vmatmul.mubr.bf16.gmra.mxu0 %v1045_v13  ;;  %v1781_v53 = vadd.f32 %v1780_v56, %v1779_v16 }
 0x380   :  { %v1782_v14 = vpop.f32.mrf.mxu1 }
 0x382   :  { %v1783_v61 = vpop.f32.mrf.mxu1 }
 0x383   :  { %v1784_v1 = vadd.f32 %v1783_v61, %v1782_v14 }
 0x384   :  { %v1785_v9 = vpop.f32.mrf.mxu1 }
 0x385   :  { %v1046_v17 = vpack.c.bf16 %v1784_v1, %v1781_v53 }
 0x386   :  { %v1786_v18 = vpop.f32.mrf.mxu1 }
 0x387   :  { %1970 = vmatprep.mubr.bf16.mxu0 %v1046_v17  ;;  %v1787_v24 = vadd.f32 %v1786_v18, %v1785_v9  ;;  %v2521_v17 = vld [vmem:[%s2611_s5] ss:$0 sm:$0xff] }
 0x388   :  { %v1788_v19 = vpop.f32.mrf.mxu1 }
 0x38a   :  { %v1789_v20 = vpop.f32.mrf.mxu1 }
 0x38b   :  { %v1790_v26 = vadd.f32 %v1789_v20, %v1788_v19 }
 0x38c   :  { %v1791_v27 = vpop.f32.mrf.mxu1 }
 0x38d   :  { %v1047_v28 = vpack.c.bf16 %v1790_v26, %v1787_v24 }
 0x38e   :  { %v1792_v29 = vpop.f32.mrf.mxu1 }
 0x38f   :  { %1971 = vmatmul.mubr.bf16.gmra.mxu0 %v1047_v28  ;;  %v1793_v32 = vadd.f32 %v1792_v29, %v1791_v27 }
 0x390   :  { %v1794_v30 = vpop.f32.mrf.mxu1 }
 0x392   :  { %v1795_v31 = vpop.f32.mrf.mxu1 }
 0x393   :  { %v1796_v33 = vadd.f32 %v1795_v31, %v1794_v30 }
 0x394   :  { %v1797_v34 = vpop.f32.mrf.mxu1 }
 0x395   :  { %v1048_v35 = vpack.c.bf16 %v1796_v33, %v1793_v32 }
 0x396   :  { %v1798_v36 = vpop.f32.mrf.mxu1 }
 0x397   :  { %1974 = vmatprep.mubr.bf16.mxu0 %v1048_v35  ;;  %v1799_v40 = vadd.f32 %v1798_v36, %v1797_v34 }
 0x398   :  { %v1800_v37 = vpop.f32.mrf.mxu1 }
 0x39a   :  { %v1801_v38 = vpop.f32.mrf.mxu1 }
 0x39b   :  { %v1802_v41 = vadd.f32 %v1801_v38, %v1800_v37 }
 0x39c   :  { %v1803_v25 = vpop.f32.mrf.mxu1 }
 0x39d   :  { %v1049_v42 = vpack.c.bf16 %v1802_v41, %v1799_v40 }
 0x39e   :  { %v1804_v3 = vpop.f32.mrf.mxu1 }
 0x39f   :  { %1975 = vmatmul.mubr.bf16.gmra.mxu0 %v1049_v42  ;;  %v1805_v62 = vadd.f32 %v1804_v3, %v1803_v25 }
 0x3a0   :  { %v1806_v15 = vpop.f32.mrf.mxu1 }
 0x3a2   :  { %v1807_v21 = vpop.f32.mrf.mxu1 }
 0x3a3   :  { %v1808_v10 = vadd.f32 %v1807_v21, %v1806_v15  ;;  %v2538_v21 = vld [vmem:[%s2612_s6] sm:$0xff] }
 0x3a4   :  { %v1809_v43 = vpop.f32.mrf.mxu1 }
 0x3a5   :  { %v1050_v50 = vpack.c.bf16 %v1808_v10, %v1805_v62  ;;  %v1581_v62 = vcombine.high %v2538_v21, %v2538_v21 }
 0x3a6   :  { %v1810_v51 = vpop.f32.mrf.mxu1 }
 0x3a7   :  { %1978 = vmatprep.mubr.bf16.mxu0 %v1050_v50  ;;  %v1811_v52 = vadd.f32 %v1810_v51, %v1809_v43 }
 0x3a8   :  { %v1812_v49 = vpop.f32.mrf.mxu1 }
 0x3aa   :  { %v1813_v54 = vpop.f32.mrf.mxu1 }
 0x3ab   :  { %v1814_v55 = vadd.f32 %v1813_v54, %v1812_v49  ;;  %v2104_v49 = vld [vmem:[#allocation10 + $0x38] sm:$0xff]   ;;  %v2249_v54 = vmov 0.0  }
 0x3ac   :  { %v1815_v48 = vpop.f32.mrf.mxu1  ;;  %1990 = vmatprep.subr.bf16.mxu1 %v2249_v54  ;;  %2006 = vmatprep.mubr.msk.bf16.mxu1 %vm2250_vm0, %v2249_v54 }
 0x3ad   :  { %v1051_v47 = vpack.c.bf16 %v1814_v55, %v1811_v52  ;;  %1991 = vmatpush3.bf16.msra.mxu1 %v2104_v49  ;;  %v2105_v52 = vld [vmem:[#allocation10 + $0x30] sm:$0xff]   ;;  %v2106_v55 = vld [vmem:[#allocation10 + $0x28] sm:$0xff]  }
 0x3ae   :  { %v1816_v4 = vpop.f32.mrf.mxu1  ;;  %1992 = vmatprep.subr.bf16.mxu1 %v2249_v54 }
 0x3af   :  { %1979 = vmatmul.mubr.bf16.gmra.mxu0 %v1051_v47  ;;  %v1817_v46 = vadd.f32 %v1816_v4, %v1815_v48  ;;  %v2107_v48 = vld [vmem:[#allocation10 + $0x20] sm:$0xff]   ;;  %v2108_v47 = vld [vmem:[#allocation10 + $0x18] sm:$0xff]  }
 0x3b0   :  { %v1818_v6 = vpop.f32.mrf.mxu1 }
 0x3b1   :  { %1993 = vmatpush3.bf16.msra.mxu1 %v2105_v52 }
 0x3b2   :  { %v1819_v57 = vpop.f32.mrf.mxu1  ;;  %1994 = vmatprep.subr.bf16.mxu1 %v2249_v54 }
 0x3b3   :  { %v1820_v0 = vadd.f32 %v1819_v57, %v1818_v6  ;;  %v2109_v6 = vld [vmem:[#allocation10 + $0x10] sm:$0xff]  }
 0x3b4   :  { %v1821_v2 = vpop.f32.mrf.mxu1 }
 0x3b5   :  { %v1052_v7 = vpack.c.bf16 %v1820_v0, %v1817_v46  ;;  %1995 = vmatpush3.bf16.msra.mxu1 %v2106_v55  ;;  %v2110_v46 = vld [vmem:[#allocation10 + $0x8] sm:$0xff]  }
 0x3b6   :  { %v1822_v45 = vpop.f32.mrf.mxu1  ;;  %1996 = vmatprep.subr.bf16.mxu1 %v2249_v54 }
 0x3b7   :  { %1982 = vmatprep.mubr.bf16.mxu0 %v1052_v7  ;;  %v1823_v5 = vadd.f32 %v1822_v45, %v1821_v2  ;;  %v2111_v2 = vld [vmem:[#allocation10] sm:$0xff]  }
 0x3b8   :  { %v1824_v11 = vpop.f32.mrf.mxu1 }
 0x3b9   :  { %1997 = vmatpush3.bf16.msra.mxu1 %v2107_v48 }
 0x3ba   :  { %v1825_v44 = vpop.f32.mrf.mxu1  ;;  %1998 = vmatprep.subr.bf16.mxu1 %v2249_v54 }
 0x3bb   :  { %v1826_v12 = vadd.f32 %v1825_v44, %v1824_v11 }
 0x3bc   :  { %v1827_v22 = vpop.f32.mrf.mxu1 }
 0x3bd   :  { %v1053_v58 = vpack.c.bf16 %v1826_v12, %v1823_v5  ;;  %1999 = vmatpush3.bf16.msra.mxu1 %v2108_v47 }
 0x3be   :  { %v1828_v8 = vpop.f32.mrf.mxu1  ;;  %2000 = vmatprep.subr.bf16.mxu1 %v2249_v54 }
 0x3bf   :  { %1983 = vmatmul.mubr.bf16.gmra.mxu0 %v1053_v58  ;;  %v1829_v63 = vadd.f32 %v1828_v8, %v1827_v22 }
 0x3c0   :  { %v1830_v39 = vpop.f32.mrf.mxu1 }
 0x3c1   :  { %2001 = vmatpush3.bf16.msra.mxu1 %v2109_v6 }
 0x3c2   :  { %v1831_v60 = vpop.f32.mrf.mxu1  ;;  %2002 = vmatprep.subr.bf16.mxu1 %v2249_v54 }
 0x3c3   :  { %v1832_v23 = vadd.f32 %v1831_v60, %v1830_v39 }
 0x3c4   :  { %v1833_v59 = vpop.f32.mrf.mxu1 }
 0x3c5   :  { %v1054_v16 = vpack.c.bf16 %v1832_v23, %v1829_v63  ;;  %2003 = vmatpush3.bf16.msra.mxu1 %v2110_v46 }
 0x3c6   :  { %v1834_v13 = vpop.f32.mrf.mxu1  ;;  %2004 = vmatprep.subr.bf16.mxu1 %v2249_v54 }
 0x3c7   :  { %1986 = vmatprep.mubr.bf16.mxu0 %v1054_v16  ;;  %v1835_v61 = vadd.f32 %v1834_v13, %v1833_v59 }
 0x3c8   :  { %v1836_v56 = vpop.f32.mrf.mxu1 }
 0x3c9   :  { %2005 = vmatpush3.bf16.msra.mxu1 %v2111_v2 }
 0x3ca   :  { %v1837_v14 = vpop.f32.mrf.mxu1 }
 0x3cb   :  { %v1838_v53 = vadd.f32 %v1837_v14, %v1836_v56 }
 0x3cd   :  { %v1055_v1 = vpack.c.bf16 %v1838_v53, %v1835_v61 }
 0x3cf   :  { %1987 = vmatmul.mubr.bf16.gmra.mxu0 %v1055_v1 }
 0x3d0   :  { %1376 = vmatprep.mubr.bf16.mxu0 %v1581_v62 }
 0x41f   :  { %v1960_v9 = vpop.f32.mrf.mxu0 }
 0x420   :  { %v1170_v19 = vadd.f32 %v1960_v9, %v2521_v17 }
 0x421   :  { %v1161_v18 = vpop.f32.mrf.mxu0 }
 0x422   :  { %v1162_v24 = vadd.f32 %v2521_v17, %v1161_v18  ;;  %v1290_v28 = vmax.f32 %v1170_v19, 0.0 }
 0x423   :  { %v1961_v20 = vpop.f32.mrf.mxu0 }
 0x424   :  { %v1173_v26 = vadd.f32 %v1961_v20, %v2521_v17  ;;  %v1288_v31 = vmax.f32 %v1162_v24, 0.0 }
 0x425   :  { %v1164_v27 = vpop.f32.mrf.mxu0 }
 0x426   :  { %v1291_v29 = vmax.f32 %v1173_v26, 0.0  ;;  %v1165_v30 = vadd.f32 %v2521_v17, %v1164_v27 }
 0x428   :  { %v2527_v32 = vpack.c.bf16 %v1291_v29, %v1290_v28  ;;  %v1289_v33 = vmax.f32 %v1165_v30, 0.0 }
 0x42a   :  { %v2529_v34 = vpack.c.bf16 %v1289_v33, %v1288_v31 }
 0x42f   :  { %v1964_v35 = vpop.f32.mrf.mxu0 }
 0x430   :  { %v1186_v37 = vadd.f32 %v1964_v35, %v2521_v17 }
 0x431   :  { %v1177_v36 = vpop.f32.mrf.mxu0 }
 0x432   :  { %v1178_v40 = vadd.f32 %v2521_v17, %v1177_v36  ;;  %v1294_v42 = vmax.f32 %v1186_v37, 0.0 }
 0x433   :  { %v1965_v38 = vpop.f32.mrf.mxu0 }
 0x434   :  { %v1189_v41 = vadd.f32 %v1965_v38, %v2521_v17  ;;  %v1292_v10 = vmax.f32 %v1178_v40, 0.0 }
 0x435   :  { %v1180_v25 = vpop.f32.mrf.mxu0 }
 0x436   :  { %v1295_v3 = vmax.f32 %v1189_v41, 0.0  ;;  %v1181_v15 = vadd.f32 %v2521_v17, %v1180_v25 }
 0x438   :  { %v2542_v43 = vpack.c.bf16 %v1295_v3, %v1294_v42  ;;  %v1293_v50 = vmax.f32 %v1181_v15, 0.0 }
 0x43a   :  { %v2544_v51 = vpack.c.bf16 %v1293_v50, %v1292_v10 }
 0x43f   :  { %v1968_v4 = vpop.f32.mrf.mxu0 }
 0x440   :  { %v1202_v10 = vadd.f32 %v1968_v4, %v2521_v17 }
 0x441   :  { %v2551_v57 = vpop.f32.mrf.mxu0 }
 0x442   :  { %v1298_v2 = vmax.f32 %v1202_v10, 0.0 }
 0x443   :  { %v1969_v0 = vpop.f32.mrf.mxu0 }
 0x444   :  { %v1205_v41 = vadd.f32 %v1969_v0, %v2521_v17 }
 0x445   :  { %v1196_v7 = vpop.f32.mrf.mxu0 }
 0x446   :  { %v1299_v55 = vmax.f32 %v1205_v41, 0.0  ;;  %v1197_v48 = vadd.f32 %v2521_v17, %v1196_v7 }
 0x44f   :  { %v1972_v45 = vpop.f32.mrf.mxu0 }
 0x450   :  { %v1218_v9 = vadd.f32 %v1972_v45, %v2521_v17  ;;  %v1194_v45 = vadd.f32 %v2521_v17, %v2551_v57 }
 0x451   :  { %v1209_v11 = vpop.f32.mrf.mxu0 }
 0x452   :  { %v1302_v33 = vmax.f32 %v1218_v9, 0.0  ;;  %v1210_v35 = vadd.f32 %v2521_v17, %v1209_v11 }
 0x453   :  { %v1973_v44 = vpop.f32.mrf.mxu0 }
 0x454   :  { %v1221_v61 = vadd.f32 %v1973_v44, %v2521_v17  ;;  %v1300_v50 = vmax.f32 %v1210_v35, 0.0  ;;  %v1325_v44 = vpack.c.bf16 %v1299_v55, %v1298_v2 }
 0x455   :  { %v1212_v5 = vpop.f32.mrf.mxu0 }
 0x456   :  { %v1303_v24 = vmax.f32 %v1221_v61, 0.0  ;;  %v1213_v26 = vadd.f32 %v2521_v17, %v1212_v5  ;;  %v1297_v5 = vmax.f32 %v1197_v48, 0.0 }
 0x458   :  { %v1327_v25 = vpack.c.bf16 %v1303_v24, %v1302_v33  ;;  %v1301_v42 = vmax.f32 %v1213_v26, 0.0 }
 0x45a   :  { %v1326_v47 = vpack.c.bf16 %v1301_v42, %v1300_v50 }
 0x45f   :  { %v2556_v12 = vpop.f32.mrf.mxu0 }
 0x461   :  { %v2558_v22 = vpop.f32.mrf.mxu0 }
 0x463   :  { %v2560_v58 = vpop.f32.mrf.mxu0 }
 0x464   :  { %v1237_v57 = vadd.f32 %v2560_v58, %v2521_v17 }
 0x465   :  { %v2562_v8 = vpop.f32.mrf.mxu0 }
 0x466   :  { %v1229_v9 = vadd.f32 %v2521_v17, %v2562_v8  ;;  %v1580_v8 = vcombine.low %v2538_v21, %v2538_v21 }
 0x46f   :  { %v1980_v39 = vpop.f32.mrf.mxu0 }
 0x470   :  { %v1250_v4 = vadd.f32 %v1980_v39, %v2521_v17 }
 0x471   :  { %v1241_v60 = vpop.f32.mrf.mxu0 }
 0x473   :  { %v1981_v63 = vpop.f32.mrf.mxu0 }
 0x474   :  { %v1253_v6 = vadd.f32 %v1981_v63, %v2521_v17  ;;  %v1310_v63 = vmax.f32 %v1250_v4, 0.0 }
 0x475   :  { %v1244_v23 = vpop.f32.mrf.mxu0 }
 0x47f   :  { %v1984_v59 = vpop.f32.mrf.mxu0 }
 0x480   :  { %v1266_v36 = vadd.f32 %v1984_v59, %v2521_v17  ;;  %v1311_v59 = vmax.f32 %v1253_v6, 0.0 }
 0x481   :  { %v1257_v16 = vpop.f32.mrf.mxu0 }
 0x482   :  { %v1314_v49 = vmax.f32 %v1266_v36, 0.0  ;;  %v1258_v52 = vadd.f32 %v2521_v17, %v1257_v16  ;;  %v1245_v16 = vadd.f32 %v2521_v17, %v1244_v23  ;;  %v1331_v61 = vpack.c.bf16 %v1311_v59, %v1310_v63 }
 0x483   :  { %v1985_v13 = vpop.f32.mrf.mxu0  ;;  %v1307_v23 = vmax.f32 %v1237_v57, 0.0 }
 0x484   :  { %v1269_v28 = vadd.f32 %v1985_v13, %v2521_v17  ;;  %v1312_v11 = vmax.f32 %v1258_v52, 0.0  ;;  %v1296_v13 = vmax.f32 %v1194_v45, 0.0  ;;  %v1309_v39 = vmax.f32 %v1245_v16, 0.0 }
 0x485   :  { %v1260_v56 = vpop.f32.mrf.mxu0 }
 0x486   :  { %v1315_v3 = vmax.f32 %v1269_v28, 0.0  ;;  %v1261_v15 = vadd.f32 %v2521_v17, %v1260_v56  ;;  %v1242_v56 = vadd.f32 %v2521_v17, %v1241_v60 }
 0x488   :  { %v1333_v46 = vpack.c.bf16 %v1315_v3, %v1314_v49  ;;  %v1313_v0 = vmax.f32 %v1261_v15, 0.0 }
 0x48a   :  { %v1332_v7 = vpack.c.bf16 %v1313_v0, %v1312_v11 }
 0x48f   :  { %v1988_v14 = vpop.f32.mrf.mxu0 }
 0x490   :  { %v1282_v1 = vadd.f32 %v1988_v14, %v2521_v17  ;;  %v1324_v14 = vpack.c.bf16 %v1297_v5, %v1296_v13 }
 0x491   :  { %v1273_v53 = vpop.f32.mrf.mxu0 }
 0x492   :  { %v1274_v19 = vadd.f32 %v2521_v17, %v1273_v53  ;;  %v1318_v29 = vmax.f32 %v1282_v1, 0.0  ;;  %v1234_v53 = vadd.f32 %v2556_v12, %v2521_v17  ;;  %v1308_v1 = vmax.f32 %v1242_v56, 0.0 }
 0x493   :  { %v1989_v18 = vpop.f32.mrf.mxu0 }
 0x494   :  { %v1285_v20 = vadd.f32 %v1989_v18, %v2521_v17  ;;  %v1316_v37 = vmax.f32 %v1274_v19, 0.0  ;;  %v1330_v18 = vpack.c.bf16 %v1309_v39, %v1308_v1  ;;  %v1306_v60 = vmax.f32 %v1234_v53, 0.0 }
 0x495   :  { %v1276_v27 = vpop.f32.mrf.mxu0  ;;  %v1226_v19 = vadd.f32 %v2521_v17, %v2558_v22 }
 0x496   :  { %v1319_v30 = vmax.f32 %v1285_v20, 0.0  ;;  %v1277_v31 = vadd.f32 %v2521_v17, %v1276_v27  ;;  %v1329_v58 = vpack.c.bf16 %v1307_v23, %v1306_v60  ;;  %v1305_v20 = vmax.f32 %v1229_v9, 0.0 }
 0x497   :  { %v1304_v24 = vmax.f32 %v1226_v19, 0.0 }
 0x498   :  { %v1335_v38 = vpack.c.bf16 %v1319_v30, %v1318_v29  ;;  %v1317_v40 = vmax.f32 %v1277_v31, 0.0 }
 0x499   :  { %v1328_v12 = vpack.c.bf16 %v1305_v20, %v1304_v24 }
 0x49a   :  { %v1334_v62 = vpack.c.bf16 %v1317_v40, %v1316_v37  ;;  %1863 = vmatprep.subr.bf16.mxu0 %v1335_v38 }
 0x49b   :  { %1864 = vmatpush3.bf16.msra.mxu0 %v1327_v25 }
 0x49c   :  { %1865 = vmatprep.subr.bf16.mxu0 %v1334_v62 }
 0x49f   :  { %1866 = vmatpush3.bf16.msra.mxu0 %v1326_v47 }
 0x4a0   :  { %1867 = vmatprep.subr.bf16.mxu0 %v1333_v46 }
 0x4a3   :  { %1868 = vmatpush3.bf16.msra.mxu0 %v1325_v44 }
 0x4a4   :  { %1869 = vmatprep.subr.bf16.mxu0 %v1332_v7 }
 0x4a7   :  { %1870 = vmatpush3.bf16.msra.mxu0 %v1324_v14 }
 0x4a8   :  { %1871 = vmatprep.subr.bf16.mxu0 %v1331_v61 }
 0x4ab   :  { %1872 = vmatpush3.bf16.msra.mxu0 %v2542_v43 }
 0x4ac   :  { %1873 = vmatprep.subr.bf16.mxu0 %v1330_v18 }
 0x4af   :  { %1874 = vmatpush3.bf16.msra.mxu0 %v2544_v51 }
 0x4b0   :  { %1875 = vmatprep.subr.bf16.mxu0 %v1329_v58 }
 0x4b3   :  { %1876 = vmatpush3.bf16.msra.mxu0 %v2527_v32  ;;  %v1582_v32 = vld [vmem:[%s2614_s8] ss:$0 sm:$0xff] }
 0x4b4   :  { %1877 = vmatprep.subr.bf16.mxu0 %v1328_v12 }
 0x4b7   :  { %1878 = vmatpush3.bf16.msra.mxu0 %v2529_v34 }
 0x4ba   :  { %1377 = vmatmul.mubr.bf16.vlgmr.msra.gmra.mxu0 %v1580_v8 }
 0x57a   :  { %v1879_v17 = vpop.f32.mrf.mxu0 }
 0x57c   :  { %v1880_v43 = vpop.f32.mrf.mxu0 }
 0x57d   :  { %v1881_v22 = vadd.f32 %v1880_v43, %v1879_v17 }
 0x57e   :  { %v1882_v26 = vpop.f32.mrf.mxu0 }
 0x57f   :  { %v1384_v51 = vpack.c.bf16 %v1881_v22, %v1881_v22 }
 0x580   :  { %v1883_v27 = vpop.f32.mrf.mxu0 }
 0x581   :  { %2007 = vmatmul.mubr.bf16.vlgmr.msra.gmra.mxu1 %v1384_v51 }
 0x641   :  { %v1490_v21 = vpop.f32.mrf.mxu1 }
 0x642   :  { %v1491_v28 = vadd.f32 %v1582_v32, %v1490_v21 }
 0x643   :  { %v2008_v34 = vpop.f32.mrf.mxu1 }
 0x644   :  { %1496 = vst [vmem:[#allocation11] sm:$0xff] %v1491_v28 }
 0x645   :  { %v1493_v29 = vpop.f32.mrf.mxu1 }
 0x646   :  { %2223 = shalt.err (!%p2220_p1)
}
 0x647   :  { %1506 = dma.vmem_to_hbm [thread:$0]  %s1504_s18, 128, %s2615_s9, [#allocation4]   ;;  %v2009_v54 = vpop.f32.mrf.mxu1 }
 0x648   :  { %2238 = dma.done.wait [#allocation4], 128  }
 0x649   :  { %2239 = vsyncadd [#allocation4], 4294967168 }
 0x64a   :  { %1510 = vsyncpa [#allocation3], 1 }
 0x64b   :  { %1511 = vsyncpa [#allocation6], 1 }
 0x64c   :  { %1512 = vsyncpa [#allocation9], 1 }
 0x64d   :  { %1513 = vsyncpa [#allocation4], 1 }

</bundles_post_ra>
